<compile_context>
chip_gen: v7x
topology: tpu7x:2x2x1
jax: 0.10.0
libtpu: 0.0.40
codegen_flags: <defaults>
</compile_context>

<pallas_src>
import functools

import numpy as np

import jax
import jax.numpy as jnp
from jax.experimental import pallas as pl
from jax.experimental.pallas import tpu as pltpu

BN_EPS = 1e-5
GN_EPS = 1e-5
NUM_GROUPS = 4


# ---------------------------------------------------------------------------
# Fully fused dense-block kernel (grid=(), whole problem resident in VMEM).
# ---------------------------------------------------------------------------
def _dense_block_kernel(x_ref, ssel_ref, st_ref, mchan_ref, mgrp_ref,
                        a1_ref, a2_ref, g1_ref, be1_ref, g2_ref, be2_ref,
                        gw_ref, gb_ref, out_ref, *scratch,
                        n_models, H, W, C, groups):
    NH, WC = x_ref.shape
    N = NH // H

    # Operators / parameter tables: loaded into values once, reused every layer.
    mchan = mchan_ref[...]            # (WC, WC) channel reduce+broadcast
    mgrp = mgrp_ref[...]              # (WC, WC) group   reduce+broadcast
    ssel = ssel_ref[...]              # (N, NH)  per-sample row selector
    st = st_ref[...]                  # (NH, N)  = ssel^T (row broadcast-back)
    g1t, be1t = g1_ref[...], be1_ref[...]     # (n_models, WC)
    g2t, be2t = g2_ref[...], be2_ref[...]     # (n_models, WC)
    gwt, gbt = gw_ref[...], gb_ref[...]       # (n_tri,    WC)

    # Image-boundary masks for the dy = 0 / dy = 2 conv taps (replaces the old
    # (NH, NH) shift-operator matmuls with XLU roll + VPU mask).
    row = jax.lax.broadcasted_iota(jnp.int32, (NH, 1), 0)
    mask_top = (row % H != 0).astype(jnp.float32)        # zero first image row
    mask_bot = (row % H != H - 1).astype(jnp.float32)    # zero last  image row

    inv_bn = 1.0 / float(NH * W)                          # per-channel count
    inv_gn = 1.0 / float(H * W * (C // groups))           # per-(sample, group)

    def conv3x3_bn(inp, a, gamma, beta, relu):
        # 3x3 SAME conv: one deep lane-dense matmul (dx taps + L/R zero pad
        # folded into `a`) + two sublane rolls for the dy taps.  Conv bias is
        # omitted: batch-stat BatchNorm cancels it exactly.
        t = jnp.dot(inp, a, preferred_element_type=jnp.float32)     # (NH, 3*WC)
        y = (pltpu.roll(t[:, :WC], shift=1, axis=0) * mask_top       # row i-1
             + t[:, WC:2 * WC]
             + pltpu.roll(t[:, 2 * WC:], shift=NH - 1, axis=0) * mask_bot)  # row i+1
        # BatchNorm (training-mode batch stats), one pass; [sum; sumsq] batched
        # into a single (2, WC) @ (WC, WC) channel reduce+broadcast matmul.
        stats = jnp.concatenate(
            [jnp.sum(y, axis=0, keepdims=True),
             jnp.sum(y * y, axis=0, keepdims=True)], axis=0)         # (2, WC)
        cs = jnp.dot(stats, mchan, preferred_element_type=jnp.float32) * inv_bn
        mean = cs[0:1, :]
        var = cs[1:2, :] - mean * mean
        y = (y - mean) * jax.lax.rsqrt(var + BN_EPS) * gamma + beta
        return jnp.maximum(y, 0.0) if relu else y

    def group_norm_scale_shift(o):
        # GroupNorm stats via the thin per-sample selector: O(N*NH*WC) instead
        # of the old dense (NH, NH) operator matmul.
        oo = jnp.concatenate([o, o * o], axis=1)                      # (NH, 2WC)
        ps = jnp.dot(ssel, oo, preferred_element_type=jnp.float32)    # (N, 2WC)
        ps2 = jnp.concatenate([ps[:, :WC], ps[:, WC:]], axis=0)       # (2N, WC)
        g = jnp.dot(ps2, mgrp, preferred_element_type=jnp.float32) * inv_gn
        gmean = g[:N, :]
        gvar = g[N:, :] - gmean * gmean
        rstd = jax.lax.rsqrt(gvar + GN_EPS)                           # (N, WC)
        # Broadcast (sample, group) scale/shift back to all rows in one matmul.
        sc_sh = jnp.dot(st, jnp.concatenate([rstd, -gmean * rstd], axis=1),
                        preferred_element_type=jnp.float32)           # (NH, 2WC)
        return sc_sh[:, :WC], sc_sh[:, WC:]

    # outputs[0] = x (input ref), outputs[1..n_models-1] = VMEM scratch,
    # outputs[n_models] = final HBM-bound output ref.
    out_refs = [x_ref] + list(scratch) + [out_ref]

    for i in range(n_models):                 # static unroll; n_models is small
        inp = out_refs[i][...].astype(jnp.float32)
        h = conv3x3_bn(inp, a1_ref[i], g1t[i:i + 1, :], be1t[i:i + 1, :], relu=True)
        h = conv3x3_bn(h, a2_ref[i], g2t[i:i + 1, :], be2t[i:i + 1, :], relu=False)

        # Dense combine: h + sum_k GroupNorm_k(prev_k) * channel_weight_k, ReLU.
        acc = h
        off = i * (i + 1) // 2
        for k in range(i + 1):
            o = out_refs[k][...].astype(jnp.float32)
            bscale, bshift = group_norm_scale_shift(o)
            # gw = gn_gamma*chw, gb = gn_beta*chw (folded on the host).
            acc = acc + (o * bscale + bshift) * gwt[off + k:off + k + 1, :] \
                      + gbt[off + k:off + k + 1, :]
        out_refs[i + 1][...] = jnp.maximum(acc, 0.0).astype(out_refs[i + 1].dtype)


# ---------------------------------------------------------------------------
# Wrapper-side (one-time) parameter / operator preprocessing.
# ---------------------------------------------------------------------------
def _conv_to_lane_operator(w, W):
    """Fold a (3,3,Cin,Cout) conv weight into a lane operator (W*Cin, 3*W*Cout).

    Block dy maps a row slab with lanes ordered (x, ci) to the dy-tap
    contribution with lanes ordered (x, co); dx taps and left/right zero
    padding are baked in.
    """
    _, _, cin, cout = w.shape
    xi = jnp.arange(W)[:, None]
    xo = jnp.arange(W)[None, :]
    dx = xi - xo + 1                                            # tap for (xi, xo)
    valid = ((dx >= 0) & (dx <= 2)).astype(w.dtype)[:, :, None, None]
    dxc = jnp.clip(dx, 0, 2)
    mats = []
    for dy in range(3):
        blk = w[dy][dxc] * valid                                # (W, W, cin, cout)
        mats.append(jnp.transpose(blk, (0, 2, 1, 3)).reshape(W * cin, W * cout))
    return jnp.concatenate(mats, axis=1)                        # (W*cin, 3*W*cout)


def make_block_constants(N, H, W, C, groups=NUM_GROUPS):
    assert C % groups == 0, "planes must be divisible by the GroupNorm groups"
    r = np.arange(N * H)
    ssel = (r[None, :] // H) == np.arange(N)[:, None]           # (N, NH) thin selector
    lane = np.arange(W * C)
    mchan = (lane[:, None] % C) == (lane[None, :] % C)          # (WC, WC)
    cg = C // groups
    mgrp = ((lane[:, None] % C) // cg) == ((lane[None, :] % C) // cg)
    f32 = lambda a: jnp.asarray(a, jnp.float32)
    return dict(ssel=f32(ssel), st=f32(ssel.T), mchan=f32(mchan), mgrp=f32(mgrp))


def prepare_kernel_params(params, W):
    """Stack per-layer params into a few arrays so the fused kernel takes a
    fixed small argument list regardless of n_models."""
    tile_c = lambda v: jnp.tile(v, (1, W))      # per-channel (.., C) -> (.., W*C)
    a1 = jnp.stack([_conv_to_lane_operator(p['w1'], W) for p in params])
    a2 = jnp.stack([_conv_to_lane_operator(p['w2'], W) for p in params])
    g1 = jnp.concatenate([tile_c(p['g1']) for p in params], axis=0)
    be1 = jnp.concatenate([tile_c(p['be1']) for p in params], axis=0)
    g2 = jnp.concatenate([tile_c(p['g2']) for p in params], axis=0)
    be2 = jnp.concatenate([tile_c(p['be2']) for p in params], axis=0)
    # GroupNorm affine folded with the channel-wise weight; rows ordered as
    # (layer 0: k=0), (layer 1: k=0..1), ...  -> layer i starts at i*(i+1)//2.
    gw = jnp.concatenate([tile_c(p['gn_gamma'] * p['chw']) for p in params], axis=0)
    gb = jnp.concatenate([tile_c(p['gn_beta'] * p['chw']) for p in params], axis=0)
    return dict(a1=a1, a2=a2, g1=g1, be1=be1, g2=g2, be2=be2, gw=gw, gb=gb)


# ---------------------------------------------------------------------------
# Forward glue: one fused pallas_call for the whole block.
# ---------------------------------------------------------------------------
def dense_block_forward(x_nchw, const, kparams, *, groups=NUM_GROUPS):
    N, C, H, W = x_nchw.shape
    n_models = kparams['a1'].shape[0]
    NH, WC = N * H, W * C
    # NCHW -> lane-dense (N*H, W*C) slab (boundary layout plumbing only).
    x = jnp.transpose(x_nchw, (0, 2, 3, 1)).reshape(NH, WC)

    kern = functools.partial(_dense_block_kernel, n_models=n_models,
                             H=H, W=W, C=C, groups=groups)
    args = (x, const['ssel'], const['st'], const['mchan'], const['mgrp'],
            kparams['a1'], kparams['a2'],
            kparams['g1'], kparams['be1'], kparams['g2'], kparams['be2'],
            kparams['gw'], kparams['gb'])
    out = pl.pallas_call(
        kern,
        out_shape=jax.ShapeDtypeStruct((NH, WC), x.dtype),
        in_specs=[pl.BlockSpec(memory_space=pltpu.MemorySpace.VMEM)
                  for _ in args],
        out_specs=pl.BlockSpec(memory_space=pltpu.MemorySpace.VMEM),
        # Intermediate layer outputs stay resident in VMEM across all layers.
        scratch_shapes=[pltpu.VMEM((NH, WC), jnp.float32)
                        for _ in range(n_models - 1)],
    )(*args)
    return jnp.transpose(out.reshape(N, H, W, C), (0, 3, 1, 2))


# ---------------------------------------------------------------------------
# Deterministic parameter init (raw layout, shared by kernel + reference).
# ---------------------------------------------------------------------------
def init_params(key, planes, n_models):
    params = []
    for i in range(n_models):
        key, k1, k2, k3, k4, k5 = jax.random.split(key, 6)
        params.append(dict(
            w1=0.1 * jax.random.normal(k1, (3, 3, planes, planes), jnp.float32),
            b1=0.1 * jax.random.normal(k2, (1, planes), jnp.float32),
            g1=jnp.ones((1, planes), jnp.float32),
            be1=jnp.zeros((1, planes), jnp.float32),
            w2=0.1 * jax.random.normal(k3, (3, 3, planes, planes), jnp.float32),
            b2=0.1 * jax.random.normal(k4, (1, planes), jnp.float32),
            g2=jnp.ones((1, planes), jnp.float32),
            be2=jnp.zeros((1, planes), jnp.float32),
            gn_gamma=jnp.ones((i + 1, planes), jnp.float32),
            gn_beta=jnp.zeros((i + 1, planes), jnp.float32),
            chw=jax.random.normal(k5, (i + 1, planes), jnp.float32),
        ))
    return params


# ---------------------------------------------------------------------------
# Pure-JAX reference (with conv biases) for correctness check.
# ---------------------------------------------------------------------------
def _ref_conv_bn(h, w, b, g, be, relu):
    y = jax.lax.conv_general_dilated(
        h, w, (1, 1), 'SAME',
        dimension_numbers=('NHWC', 'HWIO', 'NHWC')) + b.reshape(1, 1, 1, -1)
    mean = jnp.mean(y, axis=(0, 1, 2), keepdims=True)
    var = jnp.mean((y - mean) ** 2, axis=(0, 1, 2), keepdims=True)
    y = (y - mean) / jnp.sqrt(var + BN_EPS) * g.reshape(1, 1, 1, -1) \
        + be.reshape(1, 1, 1, -1)
    return jnp.maximum(y, 0.0) if relu else y


def _ref_gn(o, gamma, beta):
    N, H, W, C = o.shape
    og = o.reshape(N, H, W, NUM_GROUPS, C // NUM_GROUPS)
    mean = jnp.mean(og, axis=(1, 2, 4), keepdims=True)
    var = jnp.mean((og - mean) ** 2, axis=(1, 2, 4), keepdims=True)
    normed = ((og - mean) / jnp.sqrt(var + GN_EPS)).reshape(N, H, W, C)
    return normed * gamma.reshape(1, 1, 1, -1) + beta.reshape(1, 1, 1, -1)


def ref_forward(x_nchw, params):
    x = jnp.transpose(x_nchw, (0, 2, 3, 1))
    outputs = [x]
    for i, p in enumerate(params):
        h = _ref_conv_bn(outputs[-1], p['w1'], p['b1'], p['g1'], p['be1'], True)
        h = _ref_conv_bn(h, p['w2'], p['b2'], p['g2'], p['be2'], False)
        acc = h
        for k in range(i + 1):
            acc = acc + _ref_gn(outputs[k], p['gn_gamma'][k], p['gn_beta'][k]) \
                * p['chw'][k].reshape(1, 1, 1, -1)
        outputs.append(jnp.maximum(acc, 0.0))
    return jnp.transpose(outputs[-1], (0, 3, 1, 2))


if __name__ == "__main__":
    key = jax.random.PRNGKey(0)
    planes, n_models = 8, 2          # planes divisible by 4 (GroupNorm groups)
    N, H, W = 2, 16, 16              # W * planes = 128 -> fully lane-dense slabs

    kx, kp = jax.random.split(key)
    x = jax.random.normal(kx, (N, planes, H, W), jnp.float32)   # NCHW input
    params = init_params(kp, planes, n_models)

    const = make_block_constants(N, H, W, planes)               # one-time
    kparams = prepare_kernel_params(params, W)                  # one-time

    fwd = jax.jit(dense_block_forward)
    out = jax.block_until_ready(fwd(x, const, kparams))
    assert out.shape == (N, planes, H, W)

    ref = ref_forward(x, params)
    max_err = float(jnp.max(jnp.abs(out - ref)))
    assert max_err < 2e-3, f"mismatch vs reference: {max_err}"

    print("KERNEL_OK")
</pallas_src>

<mosaic_0001>
module attributes {stable_mosaic.version = 11 : i64} {
  func.func @_dense_block_kernel(%arg0: memref<32x128xf32, #tpu.memory_space<vmem>>, %arg1: memref<2x32xf32, #tpu.memory_space<vmem>>, %arg2: memref<32x2xf32, #tpu.memory_space<vmem>>, %arg3: memref<128x128xf32, #tpu.memory_space<vmem>>, %arg4: memref<128x128xf32, #tpu.memory_space<vmem>>, %arg5: memref<2x128x384xf32, #tpu.memory_space<vmem>>, %arg6: memref<2x128x384xf32, #tpu.memory_space<vmem>>, %arg7: memref<2x128xf32, #tpu.memory_space<vmem>>, %arg8: memref<2x128xf32, #tpu.memory_space<vmem>>, %arg9: memref<2x128xf32, #tpu.memory_space<vmem>>, %arg10: memref<2x128xf32, #tpu.memory_space<vmem>>, %arg11: memref<3x128xf32, #tpu.memory_space<vmem>>, %arg12: memref<3x128xf32, #tpu.memory_space<vmem>>, %arg13: memref<32x128xf32, #tpu.memory_space<vmem>>, %arg14: memref<32x128xf32, #tpu.memory_space<vmem>>) attributes {dimension_semantics = [], scalar_prefetch = 0 : i64, scratch_operands = 1 : i64, tpu.core_type = #tpu.core_type<tc>} {
    %c0 = arith.constant 0 : index
    %c0_0 = arith.constant 0 : index
    %0 = vector.load %arg3[%c0, %c0_0] : memref<128x128xf32, #tpu.memory_space<vmem>>, vector<128x128xf32>
    %c0_1 = arith.constant 0 : index
    %c0_2 = arith.constant 0 : index
    %1 = vector.load %arg4[%c0_1, %c0_2] : memref<128x128xf32, #tpu.memory_space<vmem>>, vector<128x128xf32>
    %c0_3 = arith.constant 0 : index
    %c0_4 = arith.constant 0 : index
    %2 = vector.load %arg1[%c0_3, %c0_4] : memref<2x32xf32, #tpu.memory_space<vmem>>, vector<2x32xf32>
    %c0_5 = arith.constant 0 : index
    %c0_6 = arith.constant 0 : index
    %3 = vector.load %arg2[%c0_5, %c0_6] : memref<32x2xf32, #tpu.memory_space<vmem>>, vector<32x2xf32>
    %c0_7 = arith.constant 0 : index
    %c0_8 = arith.constant 0 : index
    %4 = vector.load %arg7[%c0_7, %c0_8] : memref<2x128xf32, #tpu.memory_space<vmem>>, vector<2x128xf32>
    %c0_9 = arith.constant 0 : index
    %c0_10 = arith.constant 0 : index
    %5 = vector.load %arg8[%c0_9, %c0_10] : memref<2x128xf32, #tpu.memory_space<vmem>>, vector<2x128xf32>
    %c0_11 = arith.constant 0 : index
    %c0_12 = arith.constant 0 : index
    %6 = vector.load %arg9[%c0_11, %c0_12] : memref<2x128xf32, #tpu.memory_space<vmem>>, vector<2x128xf32>
    %c0_13 = arith.constant 0 : index
    %c0_14 = arith.constant 0 : index
    %7 = vector.load %arg10[%c0_13, %c0_14] : memref<2x128xf32, #tpu.memory_space<vmem>>, vector<2x128xf32>
    %c0_15 = arith.constant 0 : index
    %c0_16 = arith.constant 0 : index
    %8 = vector.load %arg11[%c0_15, %c0_16] : memref<3x128xf32, #tpu.memory_space<vmem>>, vector<3x128xf32>
    %c0_17 = arith.constant 0 : index
    %c0_18 = arith.constant 0 : index
    %9 = vector.load %arg12[%c0_17, %c0_18] : memref<3x128xf32, #tpu.memory_space<vmem>>, vector<3x128xf32>
    %10 = tpu.iota {dimensions = array<i32: 0>} : vector<32x1xi32>
    %c16_i32 = arith.constant 16 : i32
    %c0_i32 = arith.constant 0 : i32
    %11 = arith.cmpi eq, %c16_i32, %c0_i32 : i32
    %c1_i32 = arith.constant 1 : i32
    %12 = arith.select %11, %c1_i32, %c16_i32 : i32
    %13 = vector.broadcast %12 : i32 to vector<32x1xi32>
    %14 = arith.remsi %10, %13 : vector<32x1xi32>
    %c0_i32_19 = arith.constant 0 : i32
    %15 = vector.broadcast %c0_i32_19 : i32 to vector<32x1xi32>
    %16 = arith.cmpi ne, %14, %15 : vector<32x1xi32>
    %c0_i32_20 = arith.constant 0 : i32
    %17 = vector.broadcast %c0_i32_20 : i32 to vector<32x1xi32>
    %18 = arith.cmpi slt, %14, %17 : vector<32x1xi32>
    %c0_i32_21 = arith.constant 0 : i32
    %19 = arith.cmpi slt, %12, %c0_i32_21 : i32
    %20 = vector.broadcast %19 : i1 to vector<32x1xi1>
    %21 = vector.broadcast %20 : vector<32x1xi1> to vector<32x1xi1>
    %22 = arith.xori %18, %21 : vector<32x1xi1>
    %23 = arith.andi %22, %16 : vector<32x1xi1>
    %24 = vector.broadcast %12 : i32 to vector<32x1xi32>
    %25 = arith.addi %14, %24 : vector<32x1xi32>
    %26 = arith.select %23, %25, %14 : vector<32x1xi1>, vector<32x1xi32>
    %c0_i32_22 = arith.constant 0 : i32
    %27 = vector.broadcast %c0_i32_22 : i32 to vector<32x1xi32>
    %28 = arith.cmpi ne, %26, %27 : vector<32x1xi32>
    %29 = arith.extui %28 : vector<32x1xi1> to vector<32x1xi32>
    %30 = arith.sitofp %29 : vector<32x1xi32> to vector<32x1xf32>
    %c16_i32_23 = arith.constant 16 : i32
    %c0_i32_24 = arith.constant 0 : i32
    %31 = arith.cmpi eq, %c16_i32_23, %c0_i32_24 : i32
    %c1_i32_25 = arith.constant 1 : i32
    %32 = arith.select %31, %c1_i32_25, %c16_i32_23 : i32
    %33 = vector.broadcast %32 : i32 to vector<32x1xi32>
    %34 = arith.remsi %10, %33 : vector<32x1xi32>
    %c0_i32_26 = arith.constant 0 : i32
    %35 = vector.broadcast %c0_i32_26 : i32 to vector<32x1xi32>
    %36 = arith.cmpi ne, %34, %35 : vector<32x1xi32>
    %c0_i32_27 = arith.constant 0 : i32
    %37 = vector.broadcast %c0_i32_27 : i32 to vector<32x1xi32>
    %38 = arith.cmpi slt, %34, %37 : vector<32x1xi32>
    %c0_i32_28 = arith.constant 0 : i32
    %39 = arith.cmpi slt, %32, %c0_i32_28 : i32
    %40 = vector.broadcast %39 : i1 to vector<32x1xi1>
    %41 = vector.broadcast %40 : vector<32x1xi1> to vector<32x1xi1>
    %42 = arith.xori %38, %41 : vector<32x1xi1>
    %43 = arith.andi %42, %36 : vector<32x1xi1>
    %44 = vector.broadcast %32 : i32 to vector<32x1xi32>
    %45 = arith.addi %34, %44 : vector<32x1xi32>
    %46 = arith.select %43, %45, %34 : vector<32x1xi1>, vector<32x1xi32>
    %c15_i32 = arith.constant 15 : i32
    %47 = vector.broadcast %c15_i32 : i32 to vector<32x1xi32>
    %48 = arith.cmpi ne, %46, %47 : vector<32x1xi32>
    %49 = arith.extui %48 : vector<32x1xi1> to vector<32x1xi32>
    %50 = arith.sitofp %49 : vector<32x1xi32> to vector<32x1xf32>
    %c0_29 = arith.constant 0 : index
    %c0_30 = arith.constant 0 : index
    %51 = vector.load %arg0[%c0_29, %c0_30] : memref<32x128xf32, #tpu.memory_space<vmem>>, vector<32x128xf32>
    %c0_31 = arith.constant 0 : index
    %c0_32 = arith.constant 0 : index
    %c0_33 = arith.constant 0 : index
    %52 = vector.load %arg5[%c0_31, %c0_32, %c0_33] : memref<2x128x384xf32, #tpu.memory_space<vmem>>, vector<1x128x384xf32>
    %53 = vector.shape_cast %52 : vector<1x128x384xf32> to vector<128x384xf32>
    %54 = vector.extract_strided_slice %4 {offsets = [0, 0], sizes = [1, 128], strides = [1, 1]} : vector<2x128xf32> to vector<1x128xf32>
    %55 = vector.extract_strided_slice %5 {offsets = [0, 0], sizes = [1, 128], strides = [1, 1]} : vector<2x128xf32> to vector<1x128xf32>
    %cst = arith.constant dense<0.000000e+00> : vector<32x384xf32>
    %56 = tpu.matmul %51, %53, %cst {dimension_numbers = #tpu.dot_dimension_numbers<[1], [0], [0], [1], [0, 0, 1, 1], [], []>} : vector<32x128xf32>, vector<128x384xf32>, vector<32x384xf32> -> vector<32x384xf32>
    %57 = vector.extract_strided_slice %56 {offsets = [0, 0], sizes = [32, 128], strides = [1, 1]} : vector<32x384xf32> to vector<32x128xf32>
    %c1_i32_34 = arith.constant 1 : i32
    %58 = tpu.dynamic_rotate %57 by %c1_i32_34 dim 0 : vector<32x128xf32>, i32 -> vector<32x128xf32>
    %59 = vector.broadcast %30 : vector<32x1xf32> to vector<32x128xf32>
    %60 = arith.mulf %58, %59 : vector<32x128xf32>
    %61 = vector.extract_strided_slice %56 {offsets = [0, 128], sizes = [32, 128], strides = [1, 1]} : vector<32x384xf32> to vector<32x128xf32>
    %62 = arith.addf %60, %61 : vector<32x128xf32>
    %63 = vector.extract_strided_slice %56 {offsets = [0, 256], sizes = [32, 128], strides = [1, 1]} : vector<32x384xf32> to vector<32x128xf32>
    %c31_i32 = arith.constant 31 : i32
    %64 = tpu.dynamic_rotate %63 by %c31_i32 dim 0 : vector<32x128xf32>, i32 -> vector<32x128xf32>
    %65 = vector.broadcast %50 : vector<32x1xf32> to vector<32x128xf32>
    %66 = arith.mulf %64, %65 : vector<32x128xf32>
    %67 = arith.addf %62, %66 : vector<32x128xf32>
    %cst_35 = arith.constant dense<0.000000e+00> : vector<128xf32>
    %68 = vector.multi_reduction <add>, %67, %cst_35 [0] : vector<32x128xf32> to vector<128xf32>
    %69 = vector.shape_cast %68 : vector<128xf32> to vector<1x128xf32>
    %70 = arith.mulf %67, %67 : vector<32x128xf32>
    %cst_36 = arith.constant dense<0.000000e+00> : vector<128xf32>
    %71 = vector.multi_reduction <add>, %70, %cst_36 [0] : vector<32x128xf32> to vector<128xf32>
    %72 = vector.shape_cast %71 : vector<128xf32> to vector<1x128xf32>
    %73 = tpu.concatenate %69, %72 in 0 : vector<1x128xf32>, vector<1x128xf32> -> vector<2x128xf32>
    %cst_37 = arith.constant dense<0.000000e+00> : vector<2x128xf32>
    %74 = tpu.matmul %73, %0, %cst_37 {dimension_numbers = #tpu.dot_dimension_numbers<[1], [0], [0], [1], [0, 0, 1, 1], [], []>} : vector<2x128xf32>, vector<128x128xf32>, vector<2x128xf32> -> vector<2x128xf32>
    %cst_38 = arith.constant 0.001953125 : f32
    %75 = vector.broadcast %cst_38 : f32 to vector<2x128xf32>
    %76 = arith.mulf %74, %75 : vector<2x128xf32>
    %77 = vector.extract_strided_slice %76 {offsets = [0, 0], sizes = [1, 128], strides = [1, 1]} : vector<2x128xf32> to vector<1x128xf32>
    %78 = vector.extract_strided_slice %76 {offsets = [1, 0], sizes = [1, 128], strides = [1, 1]} : vector<2x128xf32> to vector<1x128xf32>
    %79 = arith.mulf %77, %77 : vector<1x128xf32>
    %80 = arith.subf %78, %79 : vector<1x128xf32>
    %81 = vector.broadcast %77 : vector<1x128xf32> to vector<32x128xf32>
    %82 = arith.subf %67, %81 : vector<32x128xf32>
    %cst_39 = arith.constant 9.99999974E-6 : f32
    %83 = vector.broadcast %cst_39 : f32 to vector<1x128xf32>
    %84 = arith.addf %80, %83 : vector<1x128xf32>
    %85 = math.rsqrt %84 : vector<1x128xf32>
    %86 = vector.broadcast %85 : vector<1x128xf32> to vector<32x128xf32>
    %87 = arith.mulf %82, %86 : vector<32x128xf32>
    %88 = vector.broadcast %54 : vector<1x128xf32> to vector<32x128xf32>
    %89 = arith.mulf %87, %88 : vector<32x128xf32>
    %90 = vector.broadcast %55 : vector<1x128xf32> to vector<32x128xf32>
    %91 = arith.addf %89, %90 : vector<32x128xf32>
    %cst_40 = arith.constant 0.000000e+00 : f32
    %92 = vector.broadcast %cst_40 : f32 to vector<32x128xf32>
    %93 = arith.maximumf %91, %92 : vector<32x128xf32>
    %c0_41 = arith.constant 0 : index
    %c0_42 = arith.constant 0 : index
    %c0_43 = arith.constant 0 : index
    %94 = vector.load %arg6[%c0_41, %c0_42, %c0_43] : memref<2x128x384xf32, #tpu.memory_space<vmem>>, vector<1x128x384xf32>
    %95 = vector.shape_cast %94 : vector<1x128x384xf32> to vector<128x384xf32>
    %96 = vector.extract_strided_slice %6 {offsets = [0, 0], sizes = [1, 128], strides = [1, 1]} : vector<2x128xf32> to vector<1x128xf32>
    %97 = vector.extract_strided_slice %7 {offsets = [0, 0], sizes = [1, 128], strides = [1, 1]} : vector<2x128xf32> to vector<1x128xf32>
    %cst_44 = arith.constant dense<0.000000e+00> : vector<32x384xf32>
    %98 = tpu.matmul %93, %95, %cst_44 {dimension_numbers = #tpu.dot_dimension_numbers<[1], [0], [0], [1], [0, 0, 1, 1], [], []>} : vector<32x128xf32>, vector<128x384xf32>, vector<32x384xf32> -> vector<32x384xf32>
    %99 = vector.extract_strided_slice %98 {offsets = [0, 0], sizes = [32, 128], strides = [1, 1]} : vector<32x384xf32> to vector<32x128xf32>
    %c1_i32_45 = arith.constant 1 : i32
    %100 = tpu.dynamic_rotate %99 by %c1_i32_45 dim 0 : vector<32x128xf32>, i32 -> vector<32x128xf32>
    %101 = vector.broadcast %30 : vector<32x1xf32> to vector<32x128xf32>
    %102 = arith.mulf %100, %101 : vector<32x128xf32>
    %103 = vector.extract_strided_slice %98 {offsets = [0, 128], sizes = [32, 128], strides = [1, 1]} : vector<32x384xf32> to vector<32x128xf32>
    %104 = arith.addf %102, %103 : vector<32x128xf32>
    %105 = vector.extract_strided_slice %98 {offsets = [0, 256], sizes = [32, 128], strides = [1, 1]} : vector<32x384xf32> to vector<32x128xf32>
    %c31_i32_46 = arith.constant 31 : i32
    %106 = tpu.dynamic_rotate %105 by %c31_i32_46 dim 0 : vector<32x128xf32>, i32 -> vector<32x128xf32>
    %107 = vector.broadcast %50 : vector<32x1xf32> to vector<32x128xf32>
    %108 = arith.mulf %106, %107 : vector<32x128xf32>
    %109 = arith.addf %104, %108 : vector<32x128xf32>
    %cst_47 = arith.constant dense<0.000000e+00> : vector<128xf32>
    %110 = vector.multi_reduction <add>, %109, %cst_47 [0] : vector<32x128xf32> to vector<128xf32>
    %111 = vector.shape_cast %110 : vector<128xf32> to vector<1x128xf32>
    %112 = arith.mulf %109, %109 : vector<32x128xf32>
    %cst_48 = arith.constant dense<0.000000e+00> : vector<128xf32>
    %113 = vector.multi_reduction <add>, %112, %cst_48 [0] : vector<32x128xf32> to vector<128xf32>
    %114 = vector.shape_cast %113 : vector<128xf32> to vector<1x128xf32>
    %115 = tpu.concatenate %111, %114 in 0 : vector<1x128xf32>, vector<1x128xf32> -> vector<2x128xf32>
    %cst_49 = arith.constant dense<0.000000e+00> : vector<2x128xf32>
    %116 = tpu.matmul %115, %0, %cst_49 {dimension_numbers = #tpu.dot_dimension_numbers<[1], [0], [0], [1], [0, 0, 1, 1], [], []>} : vector<2x128xf32>, vector<128x128xf32>, vector<2x128xf32> -> vector<2x128xf32>
    %cst_50 = arith.constant 0.001953125 : f32
    %117 = vector.broadcast %cst_50 : f32 to vector<2x128xf32>
    %118 = arith.mulf %116, %117 : vector<2x128xf32>
    %119 = vector.extract_strided_slice %118 {offsets = [0, 0], sizes = [1, 128], strides = [1, 1]} : vector<2x128xf32> to vector<1x128xf32>
    %120 = vector.extract_strided_slice %118 {offsets = [1, 0], sizes = [1, 128], strides = [1, 1]} : vector<2x128xf32> to vector<1x128xf32>
    %121 = arith.mulf %119, %119 : vector<1x128xf32>
    %122 = arith.subf %120, %121 : vector<1x128xf32>
    %123 = vector.broadcast %119 : vector<1x128xf32> to vector<32x128xf32>
    %124 = arith.subf %109, %123 : vector<32x128xf32>
    %cst_51 = arith.constant 9.99999974E-6 : f32
    %125 = vector.broadcast %cst_51 : f32 to vector<1x128xf32>
    %126 = arith.addf %122, %125 : vector<1x128xf32>
    %127 = math.rsqrt %126 : vector<1x128xf32>
    %128 = vector.broadcast %127 : vector<1x128xf32> to vector<32x128xf32>
    %129 = arith.mulf %124, %128 : vector<32x128xf32>
    %130 = vector.broadcast %96 : vector<1x128xf32> to vector<32x128xf32>
    %131 = arith.mulf %129, %130 : vector<32x128xf32>
    %132 = vector.broadcast %97 : vector<1x128xf32> to vector<32x128xf32>
    %133 = arith.addf %131, %132 : vector<32x128xf32>
    %c0_52 = arith.constant 0 : index
    %c0_53 = arith.constant 0 : index
    %134 = vector.load %arg0[%c0_52, %c0_53] : memref<32x128xf32, #tpu.memory_space<vmem>>, vector<32x128xf32>
    %135 = arith.mulf %134, %134 : vector<32x128xf32>
    %136 = tpu.concatenate %134, %135 in 1 : vector<32x128xf32>, vector<32x128xf32> -> vector<32x256xf32>
    %cst_54 = arith.constant dense<0.000000e+00> : vector<2x256xf32>
    %137 = tpu.matmul %2, %136, %cst_54 {dimension_numbers = #tpu.dot_dimension_numbers<[1], [0], [0], [1], [0, 0, 1, 1], [], []>} : vector<2x32xf32>, vector<32x256xf32>, vector<2x256xf32> -> vector<2x256xf32>
    %138 = vector.extract_strided_slice %137 {offsets = [0, 0], sizes = [2, 128], strides = [1, 1]} : vector<2x256xf32> to vector<2x128xf32>
    %139 = vector.extract_strided_slice %137 {offsets = [0, 128], sizes = [2, 128], strides = [1, 1]} : vector<2x256xf32> to vector<2x128xf32>
    %140 = tpu.concatenate %138, %139 in 0 : vector<2x128xf32>, vector<2x128xf32> -> vector<4x128xf32>
    %cst_55 = arith.constant dense<0.000000e+00> : vector<4x128xf32>
    %141 = tpu.matmul %140, %1, %cst_55 {dimension_numbers = #tpu.dot_dimension_numbers<[1], [0], [0], [1], [0, 0, 1, 1], [], []>} : vector<4x128xf32>, vector<128x128xf32>, vector<4x128xf32> -> vector<4x128xf32>
    %cst_56 = arith.constant 0.001953125 : f32
    %142 = vector.broadcast %cst_56 : f32 to vector<4x128xf32>
    %143 = arith.mulf %141, %142 : vector<4x128xf32>
    %144 = vector.extract_strided_slice %143 {offsets = [0, 0], sizes = [2, 128], strides = [1, 1]} : vector<4x128xf32> to vector<2x128xf32>
    %145 = vector.extract_strided_slice %143 {offsets = [2, 0], sizes = [2, 128], strides = [1, 1]} : vector<4x128xf32> to vector<2x128xf32>
    %146 = arith.mulf %144, %144 : vector<2x128xf32>
    %147 = arith.subf %145, %146 : vector<2x128xf32>
    %cst_57 = arith.constant 9.99999974E-6 : f32
    %148 = vector.broadcast %cst_57 : f32 to vector<2x128xf32>
    %149 = arith.addf %147, %148 : vector<2x128xf32>
    %150 = math.rsqrt %149 : vector<2x128xf32>
    %cst_58 = arith.constant 0.000000e+00 : f32
    %151 = vector.broadcast %cst_58 : f32 to vector<2x128xf32>
    %152 = arith.subf %151, %144 : vector<2x128xf32>
    %153 = arith.mulf %152, %150 : vector<2x128xf32>
    %154 = tpu.concatenate %150, %153 in 1 : vector<2x128xf32>, vector<2x128xf32> -> vector<2x256xf32>
    %cst_59 = arith.constant dense<0.000000e+00> : vector<32x256xf32>
    %155 = tpu.matmul %3, %154, %cst_59 {dimension_numbers = #tpu.dot_dimension_numbers<[1], [0], [0], [1], [0, 0, 1, 1], [], []>} : vector<32x2xf32>, vector<2x256xf32>, vector<32x256xf32> -> vector<32x256xf32>
    %156 = vector.extract_strided_slice %155 {offsets = [0, 0], sizes = [32, 128], strides = [1, 1]} : vector<32x256xf32> to vector<32x128xf32>
    %157 = vector.extract_strided_slice %155 {offsets = [0, 128], sizes = [32, 128], strides = [1, 1]} : vector<32x256xf32> to vector<32x128xf32>
    %158 = arith.mulf %134, %156 : vector<32x128xf32>
    %159 = arith.addf %158, %157 : vector<32x128xf32>
    %160 = vector.extract_strided_slice %8 {offsets = [0, 0], sizes = [1, 128], strides = [1, 1]} : vector<3x128xf32> to vector<1x128xf32>
    %161 = vector.broadcast %160 : vector<1x128xf32> to vector<32x128xf32>
    %162 = arith.mulf %159, %161 : vector<32x128xf32>
    %163 = arith.addf %133, %162 : vector<32x128xf32>
    %164 = vector.extract_strided_slice %9 {offsets = [0, 0], sizes = [1, 128], strides = [1, 1]} : vector<3x128xf32> to vector<1x128xf32>
    %165 = vector.broadcast %164 : vector<1x128xf32> to vector<32x128xf32>
    %166 = arith.addf %163, %165 : vector<32x128xf32>
    %cst_60 = arith.constant 0.000000e+00 : f32
    %167 = vector.broadcast %cst_60 : f32 to vector<32x128xf32>
    %168 = arith.maximumf %166, %167 : vector<32x128xf32>
    %c0_61 = arith.constant 0 : index
    %c0_62 = arith.constant 0 : index
    %169 = vector.load %arg14[%c0_61, %c0_62] : memref<32x128xf32, #tpu.memory_space<vmem>>, vector<32x128xf32>
    tpu.vector_store %arg14[%c0_61, %c0_62], %168 {strides = array<i32>} : memref<32x128xf32, #tpu.memory_space<vmem>>, vector<32x128xf32>,
    %c0_63 = arith.constant 0 : index
    %c0_64 = arith.constant 0 : index
    %170 = vector.load %arg14[%c0_63, %c0_64] : memref<32x128xf32, #tpu.memory_space<vmem>>, vector<32x128xf32>
    %c1 = arith.constant 1 : index
    %c0_65 = arith.constant 0 : index
    %c0_66 = arith.constant 0 : index
    %171 = vector.load %arg5[%c1, %c0_65, %c0_66] : memref<2x128x384xf32, #tpu.memory_space<vmem>>, vector<1x128x384xf32>
    %172 = vector.shape_cast %171 : vector<1x128x384xf32> to vector<128x384xf32>
    %173 = vector.extract_strided_slice %4 {offsets = [1, 0], sizes = [1, 128], strides = [1, 1]} : vector<2x128xf32> to vector<1x128xf32>
    %174 = vector.extract_strided_slice %5 {offsets = [1, 0], sizes = [1, 128], strides = [1, 1]} : vector<2x128xf32> to vector<1x128xf32>
    %cst_67 = arith.constant dense<0.000000e+00> : vector<32x384xf32>
    %175 = tpu.matmul %170, %172, %cst_67 {dimension_numbers = #tpu.dot_dimension_numbers<[1], [0], [0], [1], [0, 0, 1, 1], [], []>} : vector<32x128xf32>, vector<128x384xf32>, vector<32x384xf32> -> vector<32x384xf32>
    %176 = vector.extract_strided_slice %175 {offsets = [0, 0], sizes = [32, 128], strides = [1, 1]} : vector<32x384xf32> to vector<32x128xf32>
    %c1_i32_68 = arith.constant 1 : i32
    %177 = tpu.dynamic_rotate %176 by %c1_i32_68 dim 0 : vector<32x128xf32>, i32 -> vector<32x128xf32>
    %178 = vector.broadcast %30 : vector<32x1xf32> to vector<32x128xf32>
    %179 = arith.mulf %177, %178 : vector<32x128xf32>
    %180 = vector.extract_strided_slice %175 {offsets = [0, 128], sizes = [32, 128], strides = [1, 1]} : vector<32x384xf32> to vector<32x128xf32>
    %181 = arith.addf %179, %180 : vector<32x128xf32>
    %182 = vector.extract_strided_slice %175 {offsets = [0, 256], sizes = [32, 128], strides = [1, 1]} : vector<32x384xf32> to vector<32x128xf32>
    %c31_i32_69 = arith.constant 31 : i32
    %183 = tpu.dynamic_rotate %182 by %c31_i32_69 dim 0 : vector<32x128xf32>, i32 -> vector<32x128xf32>
    %184 = vector.broadcast %50 : vector<32x1xf32> to vector<32x128xf32>
    %185 = arith.mulf %183, %184 : vector<32x128xf32>
    %186 = arith.addf %181, %185 : vector<32x128xf32>
    %cst_70 = arith.constant dense<0.000000e+00> : vector<128xf32>
    %187 = vector.multi_reduction <add>, %186, %cst_70 [0] : vector<32x128xf32> to vector<128xf32>
    %188 = vector.shape_cast %187 : vector<128xf32> to vector<1x128xf32>
    %189 = arith.mulf %186, %186 : vector<32x128xf32>
    %cst_71 = arith.constant dense<0.000000e+00> : vector<128xf32>
    %190 = vector.multi_reduction <add>, %189, %cst_71 [0] : vector<32x128xf32> to vector<128xf32>
    %191 = vector.shape_cast %190 : vector<128xf32> to vector<1x128xf32>
    %192 = tpu.concatenate %188, %191 in 0 : vector<1x128xf32>, vector<1x128xf32> -> vector<2x128xf32>
    %cst_72 = arith.constant dense<0.000000e+00> : vector<2x128xf32>
    %193 = tpu.matmul %192, %0, %cst_72 {dimension_numbers = #tpu.dot_dimension_numbers<[1], [0], [0], [1], [0, 0, 1, 1], [], []>} : vector<2x128xf32>, vector<128x128xf32>, vector<2x128xf32> -> vector<2x128xf32>
    %cst_73 = arith.constant 0.001953125 : f32
    %194 = vector.broadcast %cst_73 : f32 to vector<2x128xf32>
    %195 = arith.mulf %193, %194 : vector<2x128xf32>
    %196 = vector.extract_strided_slice %195 {offsets = [0, 0], sizes = [1, 128], strides = [1, 1]} : vector<2x128xf32> to vector<1x128xf32>
    %197 = vector.extract_strided_slice %195 {offsets = [1, 0], sizes = [1, 128], strides = [1, 1]} : vector<2x128xf32> to vector<1x128xf32>
    %198 = arith.mulf %196, %196 : vector<1x128xf32>
    %199 = arith.subf %197, %198 : vector<1x128xf32>
    %200 = vector.broadcast %196 : vector<1x128xf32> to vector<32x128xf32>
    %201 = arith.subf %186, %200 : vector<32x128xf32>
    %cst_74 = arith.constant 9.99999974E-6 : f32
    %202 = vector.broadcast %cst_74 : f32 to vector<1x128xf32>
    %203 = arith.addf %199, %202 : vector<1x128xf32>
    %204 = math.rsqrt %203 : vector<1x128xf32>
    %205 = vector.broadcast %204 : vector<1x128xf32> to vector<32x128xf32>
    %206 = arith.mulf %201, %205 : vector<32x128xf32>
    %207 = vector.broadcast %173 : vector<1x128xf32> to vector<32x128xf32>
    %208 = arith.mulf %206, %207 : vector<32x128xf32>
    %209 = vector.broadcast %174 : vector<1x128xf32> to vector<32x128xf32>
    %210 = arith.addf %208, %209 : vector<32x128xf32>
    %cst_75 = arith.constant 0.000000e+00 : f32
    %211 = vector.broadcast %cst_75 : f32 to vector<32x128xf32>
    %212 = arith.maximumf %210, %211 : vector<32x128xf32>
    %c1_76 = arith.constant 1 : index
    %c0_77 = arith.constant 0 : index
    %c0_78 = arith.constant 0 : index
    %213 = vector.load %arg6[%c1_76, %c0_77, %c0_78] : memref<2x128x384xf32, #tpu.memory_space<vmem>>, vector<1x128x384xf32>
    %214 = vector.shape_cast %213 : vector<1x128x384xf32> to vector<128x384xf32>
    %215 = vector.extract_strided_slice %6 {offsets = [1, 0], sizes = [1, 128], strides = [1, 1]} : vector<2x128xf32> to vector<1x128xf32>
    %216 = vector.extract_strided_slice %7 {offsets = [1, 0], sizes = [1, 128], strides = [1, 1]} : vector<2x128xf32> to vector<1x128xf32>
    %cst_79 = arith.constant dense<0.000000e+00> : vector<32x384xf32>
    %217 = tpu.matmul %212, %214, %cst_79 {dimension_numbers = #tpu.dot_dimension_numbers<[1], [0], [0], [1], [0, 0, 1, 1], [], []>} : vector<32x128xf32>, vector<128x384xf32>, vector<32x384xf32> -> vector<32x384xf32>
    %218 = vector.extract_strided_slice %217 {offsets = [0, 0], sizes = [32, 128], strides = [1, 1]} : vector<32x384xf32> to vector<32x128xf32>
    %c1_i32_80 = arith.constant 1 : i32
    %219 = tpu.dynamic_rotate %218 by %c1_i32_80 dim 0 : vector<32x128xf32>, i32 -> vector<32x128xf32>
    %220 = vector.broadcast %30 : vector<32x1xf32> to vector<32x128xf32>
    %221 = arith.mulf %219, %220 : vector<32x128xf32>
    %222 = vector.extract_strided_slice %217 {offsets = [0, 128], sizes = [32, 128], strides = [1, 1]} : vector<32x384xf32> to vector<32x128xf32>
    %223 = arith.addf %221, %222 : vector<32x128xf32>
    %224 = vector.extract_strided_slice %217 {offsets = [0, 256], sizes = [32, 128], strides = [1, 1]} : vector<32x384xf32> to vector<32x128xf32>
    %c31_i32_81 = arith.constant 31 : i32
    %225 = tpu.dynamic_rotate %224 by %c31_i32_81 dim 0 : vector<32x128xf32>, i32 -> vector<32x128xf32>
    %226 = vector.broadcast %50 : vector<32x1xf32> to vector<32x128xf32>
    %227 = arith.mulf %225, %226 : vector<32x128xf32>
    %228 = arith.addf %223, %227 : vector<32x128xf32>
    %cst_82 = arith.constant dense<0.000000e+00> : vector<128xf32>
    %229 = vector.multi_reduction <add>, %228, %cst_82 [0] : vector<32x128xf32> to vector<128xf32>
    %230 = vector.shape_cast %229 : vector<128xf32> to vector<1x128xf32>
    %231 = arith.mulf %228, %228 : vector<32x128xf32>
    %cst_83 = arith.constant dense<0.000000e+00> : vector<128xf32>
    %232 = vector.multi_reduction <add>, %231, %cst_83 [0] : vector<32x128xf32> to vector<128xf32>
    %233 = vector.shape_cast %232 : vector<128xf32> to vector<1x128xf32>
    %234 = tpu.concatenate %230, %233 in 0 : vector<1x128xf32>, vector<1x128xf32> -> vector<2x128xf32>
    %cst_84 = arith.constant dense<0.000000e+00> : vector<2x128xf32>
    %235 = tpu.matmul %234, %0, %cst_84 {dimension_numbers = #tpu.dot_dimension_numbers<[1], [0], [0], [1], [0, 0, 1, 1], [], []>} : vector<2x128xf32>, vector<128x128xf32>, vector<2x128xf32> -> vector<2x128xf32>
    %cst_85 = arith.constant 0.001953125 : f32
    %236 = vector.broadcast %cst_85 : f32 to vector<2x128xf32>
    %237 = arith.mulf %235, %236 : vector<2x128xf32>
    %238 = vector.extract_strided_slice %237 {offsets = [0, 0], sizes = [1, 128], strides = [1, 1]} : vector<2x128xf32> to vector<1x128xf32>
    %239 = vector.extract_strided_slice %237 {offsets = [1, 0], sizes = [1, 128], strides = [1, 1]} : vector<2x128xf32> to vector<1x128xf32>
    %240 = arith.mulf %238, %238 : vector<1x128xf32>
    %241 = arith.subf %239, %240 : vector<1x128xf32>
    %242 = vector.broadcast %238 : vector<1x128xf32> to vector<32x128xf32>
    %243 = arith.subf %228, %242 : vector<32x128xf32>
    %cst_86 = arith.constant 9.99999974E-6 : f32
    %244 = vector.broadcast %cst_86 : f32 to vector<1x128xf32>
    %245 = arith.addf %241, %244 : vector<1x128xf32>
    %246 = math.rsqrt %245 : vector<1x128xf32>
    %247 = vector.broadcast %246 : vector<1x128xf32> to vector<32x128xf32>
    %248 = arith.mulf %243, %247 : vector<32x128xf32>
    %249 = vector.broadcast %215 : vector<1x128xf32> to vector<32x128xf32>
    %250 = arith.mulf %248, %249 : vector<32x128xf32>
    %251 = vector.broadcast %216 : vector<1x128xf32> to vector<32x128xf32>
    %252 = arith.addf %250, %251 : vector<32x128xf32>
    %c0_87 = arith.constant 0 : index
    %c0_88 = arith.constant 0 : index
    %253 = vector.load %arg0[%c0_87, %c0_88] : memref<32x128xf32, #tpu.memory_space<vmem>>, vector<32x128xf32>
    %254 = arith.mulf %253, %253 : vector<32x128xf32>
    %255 = tpu.concatenate %253, %254 in 1 : vector<32x128xf32>, vector<32x128xf32> -> vector<32x256xf32>
    %cst_89 = arith.constant dense<0.000000e+00> : vector<2x256xf32>
    %256 = tpu.matmul %2, %255, %cst_89 {dimension_numbers = #tpu.dot_dimension_numbers<[1], [0], [0], [1], [0, 0, 1, 1], [], []>} : vector<2x32xf32>, vector<32x256xf32>, vector<2x256xf32> -> vector<2x256xf32>
    %257 = vector.extract_strided_slice %256 {offsets = [0, 0], sizes = [2, 128], strides = [1, 1]} : vector<2x256xf32> to vector<2x128xf32>
    %258 = vector.extract_strided_slice %256 {offsets = [0, 128], sizes = [2, 128], strides = [1, 1]} : vector<2x256xf32> to vector<2x128xf32>
    %259 = tpu.concatenate %257, %258 in 0 : vector<2x128xf32>, vector<2x128xf32> -> vector<4x128xf32>
    %cst_90 = arith.constant dense<0.000000e+00> : vector<4x128xf32>
    %260 = tpu.matmul %259, %1, %cst_90 {dimension_numbers = #tpu.dot_dimension_numbers<[1], [0], [0], [1], [0, 0, 1, 1], [], []>} : vector<4x128xf32>, vector<128x128xf32>, vector<4x128xf32> -> vector<4x128xf32>
    %cst_91 = arith.constant 0.001953125 : f32
    %261 = vector.broadcast %cst_91 : f32 to vector<4x128xf32>
    %262 = arith.mulf %260, %261 : vector<4x128xf32>
    %263 = vector.extract_strided_slice %262 {offsets = [0, 0], sizes = [2, 128], strides = [1, 1]} : vector<4x128xf32> to vector<2x128xf32>
    %264 = vector.extract_strided_slice %262 {offsets = [2, 0], sizes = [2, 128], strides = [1, 1]} : vector<4x128xf32> to vector<2x128xf32>
    %265 = arith.mulf %263, %263 : vector<2x128xf32>
    %266 = arith.subf %264, %265 : vector<2x128xf32>
    %cst_92 = arith.constant 9.99999974E-6 : f32
    %267 = vector.broadcast %cst_92 : f32 to vector<2x128xf32>
    %268 = arith.addf %266, %267 : vector<2x128xf32>
    %269 = math.rsqrt %268 : vector<2x128xf32>
    %cst_93 = arith.constant 0.000000e+00 : f32
    %270 = vector.broadcast %cst_93 : f32 to vector<2x128xf32>
    %271 = arith.subf %270, %263 : vector<2x128xf32>
    %272 = arith.mulf %271, %269 : vector<2x128xf32>
    %273 = tpu.concatenate %269, %272 in 1 : vector<2x128xf32>, vector<2x128xf32> -> vector<2x256xf32>
    %cst_94 = arith.constant dense<0.000000e+00> : vector<32x256xf32>
    %274 = tpu.matmul %3, %273, %cst_94 {dimension_numbers = #tpu.dot_dimension_numbers<[1], [0], [0], [1], [0, 0, 1, 1], [], []>} : vector<32x2xf32>, vector<2x256xf32>, vector<32x256xf32> -> vector<32x256xf32>
    %275 = vector.extract_strided_slice %274 {offsets = [0, 0], sizes = [32, 128], strides = [1, 1]} : vector<32x256xf32> to vector<32x128xf32>
    %276 = vector.extract_strided_slice %274 {offsets = [0, 128], sizes = [32, 128], strides = [1, 1]} : vector<32x256xf32> to vector<32x128xf32>
    %277 = arith.mulf %253, %275 : vector<32x128xf32>
    %278 = arith.addf %277, %276 : vector<32x128xf32>
    %279 = vector.extract_strided_slice %8 {offsets = [1, 0], sizes = [1, 128], strides = [1, 1]} : vector<3x128xf32> to vector<1x128xf32>
    %280 = vector.broadcast %279 : vector<1x128xf32> to vector<32x128xf32>
    %281 = arith.mulf %278, %280 : vector<32x128xf32>
    %282 = arith.addf %252, %281 : vector<32x128xf32>
    %283 = vector.extract_strided_slice %9 {offsets = [1, 0], sizes = [1, 128], strides = [1, 1]} : vector<3x128xf32> to vector<1x128xf32>
    %284 = vector.broadcast %283 : vector<1x128xf32> to vector<32x128xf32>
    %285 = arith.addf %282, %284 : vector<32x128xf32>
    %c0_95 = arith.constant 0 : index
    %c0_96 = arith.constant 0 : index
    %286 = vector.load %arg14[%c0_95, %c0_96] : memref<32x128xf32, #tpu.memory_space<vmem>>, vector<32x128xf32>
    %287 = arith.mulf %286, %286 : vector<32x128xf32>
    %288 = tpu.concatenate %286, %287 in 1 : vector<32x128xf32>, vector<32x128xf32> -> vector<32x256xf32>
    %cst_97 = arith.constant dense<0.000000e+00> : vector<2x256xf32>
    %289 = tpu.matmul %2, %288, %cst_97 {dimension_numbers = #tpu.dot_dimension_numbers<[1], [0], [0], [1], [0, 0, 1, 1], [], []>} : vector<2x32xf32>, vector<32x256xf32>, vector<2x256xf32> -> vector<2x256xf32>
    %290 = vector.extract_strided_slice %289 {offsets = [0, 0], sizes = [2, 128], strides = [1, 1]} : vector<2x256xf32> to vector<2x128xf32>
    %291 = vector.extract_strided_slice %289 {offsets = [0, 128], sizes = [2, 128], strides = [1, 1]} : vector<2x256xf32> to vector<2x128xf32>
    %292 = tpu.concatenate %290, %291 in 0 : vector<2x128xf32>, vector<2x128xf32> -> vector<4x128xf32>
    %cst_98 = arith.constant dense<0.000000e+00> : vector<4x128xf32>
    %293 = tpu.matmul %292, %1, %cst_98 {dimension_numbers = #tpu.dot_dimension_numbers<[1], [0], [0], [1], [0, 0, 1, 1], [], []>} : vector<4x128xf32>, vector<128x128xf32>, vector<4x128xf32> -> vector<4x128xf32>
    %cst_99 = arith.constant 0.001953125 : f32
    %294 = vector.broadcast %cst_99 : f32 to vector<4x128xf32>
    %295 = arith.mulf %293, %294 : vector<4x128xf32>
    %296 = vector.extract_strided_slice %295 {offsets = [0, 0], sizes = [2, 128], strides = [1, 1]} : vector<4x128xf32> to vector<2x128xf32>
    %297 = vector.extract_strided_slice %295 {offsets = [2, 0], sizes = [2, 128], strides = [1, 1]} : vector<4x128xf32> to vector<2x128xf32>
    %298 = arith.mulf %296, %296 : vector<2x128xf32>
    %299 = arith.subf %297, %298 : vector<2x128xf32>
    %cst_100 = arith.constant 9.99999974E-6 : f32
    %300 = vector.broadcast %cst_100 : f32 to vector<2x128xf32>
    %301 = arith.addf %299, %300 : vector<2x128xf32>
    %302 = math.rsqrt %301 : vector<2x128xf32>
    %cst_101 = arith.constant 0.000000e+00 : f32
    %303 = vector.broadcast %cst_101 : f32 to vector<2x128xf32>
    %304 = arith.subf %303, %296 : vector<2x128xf32>
    %305 = arith.mulf %304, %302 : vector<2x128xf32>
    %306 = tpu.concatenate %302, %305 in 1 : vector<2x128xf32>, vector<2x128xf32> -> vector<2x256xf32>
    %cst_102 = arith.constant dense<0.000000e+00> : vector<32x256xf32>
    %307 = tpu.matmul %3, %306, %cst_102 {dimension_numbers = #tpu.dot_dimension_numbers<[1], [0], [0], [1], [0, 0, 1, 1], [], []>} : vector<32x2xf32>, vector<2x256xf32>, vector<32x256xf32> -> vector<32x256xf32>
    %308 = vector.extract_strided_slice %307 {offsets = [0, 0], sizes = [32, 128], strides = [1, 1]} : vector<32x256xf32> to vector<32x128xf32>
    %309 = vector.extract_strided_slice %307 {offsets = [0, 128], sizes = [32, 128], strides = [1, 1]} : vector<32x256xf32> to vector<32x128xf32>
    %310 = arith.mulf %286, %308 : vector<32x128xf32>
    %311 = arith.addf %310, %309 : vector<32x128xf32>
    %312 = vector.extract_strided_slice %8 {offsets = [2, 0], sizes = [1, 128], strides = [1, 1]} : vector<3x128xf32> to vector<1x128xf32>
    %313 = vector.broadcast %312 : vector<1x128xf32> to vector<32x128xf32>
    %314 = arith.mulf %311, %313 : vector<32x128xf32>
    %315 = arith.addf %285, %314 : vector<32x128xf32>
    %316 = vector.extract_strided_slice %9 {offsets = [2, 0], sizes = [1, 128], strides = [1, 1]} : vector<3x128xf32> to vector<1x128xf32>
    %317 = vector.broadcast %316 : vector<1x128xf32> to vector<32x128xf32>
    %318 = arith.addf %315, %317 : vector<32x128xf32>
    %cst_103 = arith.constant 0.000000e+00 : f32
    %319 = vector.broadcast %cst_103 : f32 to vector<32x128xf32>
    %320 = arith.maximumf %318, %319 : vector<32x128xf32>
    %c0_104 = arith.constant 0 : index
    %c0_105 = arith.constant 0 : index
    %321 = vector.load %arg13[%c0_104, %c0_105] : memref<32x128xf32, #tpu.memory_space<vmem>>, vector<32x128xf32>
    tpu.vector_store %arg13[%c0_104, %c0_105], %320 {strides = array<i32>} : memref<32x128xf32, #tpu.memory_space<vmem>>, vector<32x128xf32>,
    return
  }
}

</mosaic_0001>

<bundles_post_ra>
// kernel: dense_block_forward.1
= control target key start
LH: loop header
LB: loop body
LE: loop exit
PB: predicated region body
PF: predicated region fallthrough
CT: control target
= control target key end

     0   :  { %18 = vsyncpa [#allocation4], 0  ;;  %s3825_s25 = smov [#allocation3]   ;;  %s4967_s0 = inlined_call_operand.vmem [shape: f32[32,128], index: 0, kind: input, shape index: {}]   ;;  %s4968_s1 = inlined_call_operand.vmem [shape: f32[2,32], index: 1, kind: input, shape index: {}]   ;;  %s4969_s2 = inlined_call_operand.vmem [shape: f32[32,2], index: 2, kind: input, shape index: {}]   ;;  %s4970_s3 = inlined_call_operand.vmem [shape: f32[128,128], index: 3, kind: input, shape index: {}]   ;;  %s4971_s4 = inlined_call_operand.vmem [shape: f32[128,128], index: 4, kind: input, shape index: {}]   ;;  %s4972_s5 = inlined_call_operand.vmem [shape: f32[2,128,384], index: 5, kind: input, shape index: {}]   ;;  %s4973_s6 = inlined_call_operand.hbm [shape: f32[2,128,384], index: 6, kind: input, shape index: {}]   ;;  %s4974_s7 = inlined_call_operand.vmem [shape: f32[2,128], index: 7, kind: input, shape index: {}]   ;;  %s4975_s8 = inlined_call_operand.vmem [shape: f32[2,128], index: 8, kind: input, shape index: {}]   ;;  %s4976_s9 = inlined_call_operand.vmem [shape: f32[2,128], index: 9, kind: input, shape index: {}]   ;;  %s4977_s10 = inlined_call_operand.vmem [shape: f32[2,128], index: 10, kind: input, shape index: {}]   ;;  %s4978_s11 = inlined_call_operand.vmem [shape: f32[3,128], index: 11, kind: input, shape index: {}]   ;;  %s4979_s12 = inlined_call_operand.vmem [shape: f32[3,128], index: 12, kind: input, shape index: {}]   ;;  %s4980_s13 = inlined_call_operand.vmem [shape: f32[32,128], index: 13, kind: output, shape index: {}]  }
   0x1   :  { %s36_s26 = sshll.u32 %s3825_s25, 4  ;;  %s3801_s29 = scalar_lea.hbm %s4973_s6, 12288  ;;  %s37_s26 = int_to_ptr.vmem [resolvable:$true] %s36_s26 }
   0x2   :  { %p3802_p0 = scmp.ne.s32.totalorder %s4973_s6, %s3801_s29  ;;  %p3805_p1 = scmp.lt.u32.totalorder %s3801_s29, %s4973_s6 }
   0x4   :  { %p3807_p2 = pnand %p3805_p1, %p3802_p0 }
   0x6   :  { %3810 = shalt.err (!%p3807_p2)
}
   0x7   :  { %s3811_s17 = scalar_lea.vmem %s37_s26, 12288  ;;  %p3816_p4 = scmp.lt.s32.totalorder %s37_s26, %s37_s26 }
   0x8   :  { %p3812_p3 = scmp.ne.s32.totalorder %s37_s26, %s3811_s17  ;;  %p3817_p5 = scmp.lt.s32.totalorder %s3811_s17, %s3811_s17 }
   0xa   :  { %p3818_p6 = por %p3817_p5, %p3816_p4 }
   0xc   :  { %p3819_p7 = pnand %p3818_p6, %p3812_p3 }
   0xe   :  { %3822 = shalt.err (!%p3819_p7)
}
   0xf   :  { %s3826_s18 = smov 384   ;;  %s3827_s19 = smov 24  }
  0x10   :  { %42 = dma.hbm_to_vmem [thread:$0]  %s4973_s6, 12288, %s37_s26, [#allocation4], %s3826_s18, %s3826_s18, %s3827_s19  }
  0x11   :  { %3823 = dma.done.wait [#allocation4], 12288  }
  0x12   :  { %3824 = vsyncadd [#allocation4], 4294955008  ;;  %v3828_v0 = vmov 0.0   ;;  %v183_v1 = vld [vmem:[%s4972_s5 + $0x8] sm:$0xff]  ;;  %v186_v2 = vld [vmem:[%s4972_s5 + $0x20] sm:$0xff]  ;;  %vm3830_vm0 = vmmov 0  }
  0x13   :  { %294 = vmatprep.mubr.f32.mxu0 %v3828_v0  ;;  %v184_v3 = vld [vmem:[%s4972_s5 + $0x10] sm:$0xff]  ;;  %v3320_v4 = vpack.c.bf16 %v186_v2, %v183_v1  ;;  %v187_v5 = vld [vmem:[%s4972_s5 + $0x28] sm:$0xff]  ;;  %v182_v6 = vld [vmem:[%s4972_s5] sm:$0xff]  ;;  %vm460_vm7 = vcmask 1040384   ;;  %vm967_vm8 = vcmask 261120   ;;  %vm1045_vm9 = vcmask 1041408  }
  0x14   :  { %v185_v7 = vld [vmem:[%s4972_s5 + $0x18] sm:$0xff]  ;;  %v3352_v8 = vpack.c.bf16 %v187_v5, %v184_v3  ;;  %v192_v11 = vld [vmem:[%s4972_s5 + $0x50] sm:$0xff]  ;;  %v190_v12 = vld [vmem:[%s4972_s5 + $0x40] sm:$0xff]  ;;  %vm1133_vm10 = vcmask 15360  }
  0x15   :  { %v3322_v9 = vpack.c.bf16 %v185_v7, %v182_v6  ;;  %v189_v10 = vld [vmem:[%s4972_s5 + $0x38] sm:$0xff]  ;;  %3321 = vmatprep.subr.bf16.mxu0 %v3320_v4  ;;  %v188_v15 = vld [vmem:[%s4972_s5 + $0x30] sm:$0xff]  ;;  %v191_v16 = vld [vmem:[%s4972_s5 + $0x48] sm:$0xff] }
  0x16   :  { %v3324_v13 = vpack.c.bf16 %v192_v11, %v189_v10  ;;  %v193_v14 = vld [vmem:[%s4972_s5 + $0x58] sm:$0xff]  ;;  %3353 = vmatprep.subr.bf16.mxu1 %v3352_v8  ;;  %v3326_v18 = vpack.c.bf16 %v191_v16, %v188_v15  ;;  %v195_v19 = vld [vmem:[%s4972_s5 + $0x68] sm:$0xff]  ;;  %v198_v20 = vld [vmem:[%s4972_s5 + $0x80] sm:$0xff] }
  0x17   :  { %3323 = vmatpush1.bf16.msra.mxu0 %v3322_v9  ;;  %v3356_v17 = vpack.c.bf16 %v193_v14, %v190_v12  ;;  %v196_v21 = vld [vmem:[%s4972_s5 + $0x70] sm:$0xff]  ;;  %3355 = vmatpush3.bf16.msra.mxu1 %v3352_v8  ;;  %v3328_v22 = vpack.c.bf16 %v198_v20, %v195_v19  ;;  %v199_v23 = vld [vmem:[%s4972_s5 + $0x88] sm:$0xff]  ;;  %v194_v24 = vld [vmem:[%s4972_s5 + $0x60] sm:$0xff] }
  0x18   :  { %3325 = vmatprep.subr.bf16.mxu0 %v3324_v13  ;;  %v197_v25 = vld [vmem:[%s4972_s5 + $0x78] sm:$0xff]  ;;  %v3360_v26 = vpack.c.bf16 %v199_v23, %v196_v21  ;;  %v204_v28 = vld [vmem:[%s4972_s5 + $0xb0] sm:$0xff]  ;;  %v202_v29 = vld [vmem:[%s4972_s5 + $0xa0] sm:$0xff] }
  0x19   :  { %3357 = vmatprep.subr.bf16.mxu1 %v3356_v17  ;;  %v201_v27 = vld [vmem:[%s4972_s5 + $0x98] sm:$0xff]  ;;  %v3330_v31 = vpack.c.bf16 %v197_v25, %v194_v24  ;;  %v200_v33 = vld [vmem:[%s4972_s5 + $0x90] sm:$0xff]  ;;  %v203_v34 = vld [vmem:[%s4972_s5 + $0xa8] sm:$0xff] }
  0x1a   :  { %v205_v30 = vld [vmem:[%s4972_s5 + $0xb8] sm:$0xff]  ;;  %v3332_v32 = vpack.c.bf16 %v204_v28, %v201_v27  ;;  %v207_v36 = vld [vmem:[%s4972_s5 + $0xc8] sm:$0xff]  ;;  %v210_v37 = vld [vmem:[%s4972_s5 + $0xe0] sm:$0xff]  ;;  %v3334_v40 = vpack.c.bf16 %v203_v34, %v200_v33 }
  0x1b   :  { %3327 = vmatpush1.bf16.msra.mxu0 %v3326_v18  ;;  %3359 = vmatpush3.bf16.msra.mxu1 %v3356_v17  ;;  %v3364_v35 = vpack.c.bf16 %v205_v30, %v202_v29  ;;  %v208_v38 = vld [vmem:[%s4972_s5 + $0xd0] sm:$0xff]  ;;  %v211_v39 = vld [vmem:[%s4972_s5 + $0xe8] sm:$0xff]  ;;  %v3336_v41 = vpack.c.bf16 %v210_v37, %v207_v36  ;;  %v206_v42 = vld [vmem:[%s4972_s5 + $0xc0] sm:$0xff]  ;;  %v3829_v17 = vmov 0.0|0.0  }
  0x1c   :  { %3329 = vmatprep.subr.bf16.mxu0 %v3328_v22  ;;  %3361 = vmatprep.subr.bf16.mxu1 %v3360_v26  ;;  %v209_v43 = vld [vmem:[%s4972_s5 + $0xd8] sm:$0xff]  ;;  %v3368_v44 = vpack.c.bf16 %v211_v39, %v208_v38  ;;  %v216_v46 = vld [vmem:[%s4972_s5 + $0x110] sm:$0xff]  ;;  %v214_v47 = vld [vmem:[%s4972_s5 + $0x100] sm:$0xff]  ;;  %v101_v39 = vlaneseq }
  0x1d   :  { %v213_v45 = vld [vmem:[%s4972_s5 + $0xf8] sm:$0xff]  ;;  %v3338_v49 = vpack.c.bf16 %v209_v43, %v206_v42  ;;  %v4019_v50 = vld [vmem:[%s4967_s0] sm:$0xff]  ;;  %v212_v52 = vld [vmem:[%s4972_s5 + $0xf0] sm:$0xff] }
  0x1e   :  { %v217_v48 = vld [vmem:[%s4972_s5 + $0x118] sm:$0xff]  ;;  %v3340_v51 = vpack.c.bf16 %v216_v46, %v213_v45  ;;  %v215_v53 = vld [vmem:[%s4972_s5 + $0x108] sm:$0xff]  ;;  %v222_v56 = vld [vmem:[%s4972_s5 + $0x140] sm:$0xff]  ;;  %2955 = vmatprep.mubr.f32.mxu1 %v4019_v50 }
  0x1f   :  { %3331 = vmatpush1.bf16.msra.mxu0 %v3330_v31  ;;  %3363 = vmatpush3.bf16.msra.mxu1 %v3360_v26  ;;  %v3372_v54 = vpack.c.bf16 %v217_v48, %v214_v47  ;;  %v219_v55 = vld [vmem:[%s4972_s5 + $0x128] sm:$0xff]  ;;  %v220_v57 = vld [vmem:[%s4972_s5 + $0x130] sm:$0xff]  ;;  %v3342_v59 = vpack.c.bf16 %v215_v53, %v212_v52  ;;  %v218_v61 = vld [vmem:[%s4972_s5 + $0x120] sm:$0xff] }
  0x20   :  { %3333 = vmatprep.subr.bf16.mxu0 %v3332_v32  ;;  %3365 = vmatprep.subr.bf16.mxu1 %v3364_v35  ;;  %v223_v58 = vld [vmem:[%s4972_s5 + $0x148] sm:$0xff]  ;;  %v3344_v60 = vpack.c.bf16 %v222_v56, %v219_v55  ;;  %v221_v62 = vld [vmem:[%s4972_s5 + $0x138] sm:$0xff]  ;;  %v228_v2 = vld [vmem:[%s4972_s5 + $0x170] sm:$0xff] }
  0x21   :  { %v3376_v63 = vpack.c.bf16 %v223_v58, %v220_v57  ;;  %v225_v1 = vld [vmem:[%s4972_s5 + $0x158] sm:$0xff]  ;;  %v226_v3 = vld [vmem:[%s4972_s5 + $0x160] sm:$0xff]  ;;  %v3346_v5 = vpack.c.bf16 %v221_v62, %v218_v61  ;;  %v224_v7 = vld [vmem:[%s4972_s5 + $0x150] sm:$0xff] }
  0x22   :  { %v229_v4 = vld [vmem:[%s4972_s5 + $0x178] sm:$0xff]  ;;  %v3348_v6 = vpack.c.bf16 %v228_v2, %v225_v1  ;;  %v227_v8 = vld [vmem:[%s4972_s5 + $0x168] sm:$0xff]  ;;  %v4072_v12 = vld [vmem:[%s4967_s0 + $0x10] sm:$0xff] }
  0x23   :  { %3335 = vmatpush1.bf16.msra.mxu0 %v3334_v40  ;;  %3367 = vmatpush3.bf16.msra.mxu1 %v3364_v35  ;;  %v3380_v9 = vpack.c.bf16 %v229_v4, %v226_v3  ;;  %v3350_v10 = vpack.c.bf16 %v227_v8, %v224_v7  ;;  %v4067_v11 = vld [vmem:[%s4967_s0 + $0x8] sm:$0xff]  ;;  %v4081_v13 = vld [vmem:[%s4967_s0 + $0x18] sm:$0xff]  ;;  %v58_v14 = vld [vmem:[%s4970_s3] sm:$0xff]  ;;  %v4172_v40 = vshrl.u32 %v101_v39, 7 }
  0x24   :  { %3337 = vmatprep.subr.bf16.mxu0 %v3336_v41  ;;  %3369 = vmatprep.subr.bf16.mxu1 %v3368_v44  ;;  %v59_v15 = vld [vmem:[%s4970_s3 + $0x8] sm:$0xff]  ;;  %v60_v18 = vld [vmem:[%s4970_s3 + $0x10] sm:$0xff]  ;;  %v61_v19 = vld [vmem:[%s4970_s3 + $0x18] sm:$0xff] }
  0x25   :  { %v4096_v16 = vpack.c.bf16 %v59_v15, %v58_v14  ;;  %v4107_v20 = vpack.c.bf16 %v61_v19, %v60_v18  ;;  %v62_v21 = vld [vmem:[%s4970_s3 + $0x20] sm:$0xff]  ;;  %v63_v22 = vld [vmem:[%s4970_s3 + $0x28] sm:$0xff]  ;;  %v64_v24 = vld [vmem:[%s4970_s3 + $0x30] sm:$0xff]  ;;  %v103_v41 = vadd.s32 8, %v4172_v40  ;;  %v104_v42 = vadd.s32 16, %v4172_v40 }
  0x26   :  { %v4117_v23 = vpack.c.bf16 %v63_v22, %v62_v21  ;;  %v65_v25 = vld [vmem:[%s4970_s3 + $0x38] sm:$0xff]  ;;  %v66_v27 = vld [vmem:[%s4970_s3 + $0x40] sm:$0xff]  ;;  %v67_v28 = vld [vmem:[%s4970_s3 + $0x48] sm:$0xff]  ;;  %vm425_vm1 = vcmp.lt.s32.totalorder %v4172_v40, 7  ;;  %vm408_vm2 = vcmp.lt.s32.totalorder %v4172_v40, 1  ;;  %v110_v61 = vand.u32 15, %v4172_v40 }
  0x27   :  { %3339 = vmatpush1.bf16.msra.mxu0 %v3338_v49  ;;  %3371 = vmatpush3.bf16.msra.mxu1 %v3368_v44  ;;  %v4127_v26 = vpack.c.bf16 %v65_v25, %v64_v24  ;;  %v4137_v29 = vpack.c.bf16 %v67_v28, %v66_v27  ;;  %v68_v30 = vld [vmem:[%s4970_s3 + $0x50] sm:$0xff]  ;;  %v69_v31 = vld [vmem:[%s4970_s3 + $0x58] sm:$0xff]  ;;  %v70_v33 = vld [vmem:[%s4970_s3 + $0x60] sm:$0xff]  ;;  %v117_v44 = vand.u32 15, %v103_v41  ;;  %v124_v48 = vand.u32 15, %v104_v42 }
  0x28   :  { %3341 = vmatprep.subr.bf16.mxu0 %v3340_v51  ;;  %3373 = vmatprep.subr.bf16.mxu1 %v3372_v54  ;;  %v4147_v32 = vpack.c.bf16 %v69_v31, %v68_v30  ;;  %v71_v34 = vld [vmem:[%s4970_s3 + $0x68] sm:$0xff]  ;;  %v72_v35 = vld [vmem:[%s4970_s3 + $0x70] sm:$0xff]  ;;  %v73_v37 = vld [vmem:[%s4970_s3 + $0x78] sm:$0xff]  ;;  %v105_v49 = vadd.s32 24, %v4172_v40  ;;  %vm154_vm5 = vcmp.ne.s32.totalorder %v110_v61, 0 }
  0x29   :  { %v4160_v36 = vpack.c.bf16 %v71_v34, %v70_v33  ;;  %v4168_v38 = vpack.c.bf16 %v73_v37, %v72_v35  ;;  %vm167_vm3 = vcmp.ne.s32.totalorder %v117_v44, 15  ;;  %vm156_vm4 = vcmp.ne.s32.totalorder %v124_v48, 0 }
  0x2a   :  { %v131_v62 = vand.u32 15, %v105_v49  ;;  %v4185_v1 = vsel %vm167_vm3, 1.0, %v3828_v0  ;;  %v4192_v8 = vsel %vm156_vm4, 1.0, %v3828_v0  ;;  %v4203_v22 = vsel %vm154_vm5, 1.0, %v3828_v0 }
  0x2b   :  { %3343 = vmatpush1.bf16.msra.mxu0 %v3342_v59  ;;  %3375 = vmatpush3.bf16.msra.mxu1 %v3372_v54 }
  0x2c   :  { %3345 = vmatprep.subr.bf16.mxu0 %v3344_v60  ;;  %3377 = vmatprep.subr.bf16.mxu1 %v3376_v63  ;;  %vm169_vm6 = vcmp.ne.s32.totalorder %v131_v62, 15 }
  0x2d   :  { %v4206_v25 = vsel %vm169_vm6, 1.0, %v3828_v0 }
  0x2f   :  { %3347 = vmatpush1.bf16.msra.mxu0 %v3346_v5  ;;  %3379 = vmatpush3.bf16.msra.mxu1 %v3376_v63 }
  0x30   :  { %3349 = vmatprep.subr.bf16.mxu0 %v3348_v6  ;;  %3381 = vmatprep.subr.bf16.mxu1 %v3380_v9 }
  0x33   :  { %3351 = vmatpush1.bf16.msra.mxu0 %v3350_v10  ;;  %3383 = vmatpush3.bf16.msra.mxu1 %v3380_v9 }
  0x34   :  { %3384 = vmatprep.subr.bf16.mxu0 %v3829_v17 }
  0x36   :  { %295 = vmatmul.mubr.f32.vlgmr.msra.gmra.mrb[0].mxu0 %v4019_v50  ;;  %2956 = vmatmul.mubr.f32.vlgmr.msra.gmra.mrb[0].mxu1 %v4067_v11 }
  0x37   :  { %300 = vmatprep.mubr.f32.mxu0 %v3828_v0  ;;  %2958 = vmatprep.mubr.f32.mxu1 %v4072_v12 }
  0x38   :  { %3386 = vmatpush3.bf16.msra.mxu0 %v4096_v16 }
  0x39   :  { %3387 = vmatprep.subr.bf16.mxu0 %v3829_v17 }
  0x3a   :  { %301 = vmatmul.mubr.f32.gmra.mrb[2].mxu0 %v4067_v11  ;;  %2959 = vmatmul.mubr.f32.gmra.mrb[2].mxu1 %v4081_v13 }
  0x3b   :  { %306 = vmatprep.mubr.f32.mxu0 %v3828_v0  ;;  %688 = vmatprep.mubr.f32.mxu1 %v3828_v0 }
  0x3c   :  { %3389 = vmatpush3.bf16.msra.mxu0 %v4107_v20 }
  0x3d   :  { %3390 = vmatprep.subr.bf16.mxu0 %v3829_v17 }
  0x3e   :  { %307 = vmatmul.mubr.f32.gmra.mrb[4].mxu0 %v4072_v12 }
  0x3f   :  { %312 = vmatprep.mubr.f32.mxu0 %v3828_v0 }
  0x40   :  { %3392 = vmatpush3.bf16.msra.mxu0 %v4117_v23 }
  0x41   :  { %3393 = vmatprep.subr.bf16.mxu0 %v3829_v17 }
  0x42   :  { %313 = vmatmul.mubr.f32.gmra.mrb[6].mxu0 %v4081_v13 }
  0x43   :  { %2993 = vmatprep.mubr.msk.f32.mxu0 %vm3830_vm0, %v3828_v0 }
  0x44   :  { %3395 = vmatpush3.bf16.msra.mxu0 %v4127_v26 }
  0x45   :  { %3396 = vmatprep.subr.bf16.mxu0 %v3829_v17 }
  0x48   :  { %3398 = vmatpush3.bf16.msra.mxu0 %v4137_v29 }
  0x49   :  { %3399 = vmatprep.subr.bf16.mxu0 %v3829_v17 }
  0x4c   :  { %3401 = vmatpush3.bf16.msra.mxu0 %v4147_v32 }
  0x4d   :  { %3402 = vmatprep.subr.bf16.mxu0 %v3829_v17 }
  0x50   :  { %3404 = vmatpush3.bf16.msra.mxu0 %v4160_v36 }
  0x51   :  { %3405 = vmatprep.subr.bf16.mxu0 %v3829_v17 }
  0x54   :  { %3407 = vmatpush3.bf16.msra.mxu0 %v4168_v38 }
 0x109   :  { %v296_v43 = vpop.f32.mrb[0].mxu0  ;;  %v2957_v46 = vpop.f32.mrb[0].mxu1 }
 0x10a   :  { %v298_v45 = vpop.f32.mrb[1].mxu0  ;;  %v385_v47 = vpop.f32.mrb[1].mxu1  ;;  %v422_v51 = vrot.slane %v2957_v46, 1  ;;  %v404_v54 = vrot.slane %v296_v43, 7 }
 0x10b   :  { %v421_v52 = vrot.slane %v385_v47, 1 }
 0x10d   :  { %v302_v53 = vpop.f32.mrb[2].mxu0  ;;  %v428_v55 = vsel %vm425_vm1, %v421_v52, %v422_v51  ;;  %v2960_v57 = vpop.f32.mrb[2].mxu1 }
 0x10e   :  { %v405_v56 = vrot.slane %v302_v53, 7  ;;  %v304_v58 = vpop.f32.mrb[3].mxu0  ;;  %v424_v59 = vrot.slane %v2960_v57, 1  ;;  %v395_v60 = vpop.f32.mrb[3].mxu1 }
 0x10f   :  { %v423_v2 = vrot.slane %v395_v60, 1 }
 0x110   :  { %v411_v63 = vsel %vm408_vm2, %v404_v54, %v405_v56  ;;  %v429_v3 = vsel %vm425_vm1, %v424_v59, %v421_v52 }
 0x111   :  { %v418_v4 = vadd.f32 %v411_v63, %v304_v58  ;;  %v308_v5 = vpop.f32.mrb[4].mxu0  ;;  %v427_v6 = vsel %vm425_vm1, %v422_v51, %v423_v2  ;;  %v426_v10 = vsel %vm425_vm1, %v423_v2, %v424_v59  ;;  %v433_v37 = vmul.f32 %v4206_v25, %v429_v3 }
 0x112   :  { %v406_v7 = vrot.slane %v308_v5, 7  ;;  %v310_v9 = vpop.f32.mrb[5].mxu0  ;;  %v431_v14 = vmul.f32 %v4185_v1, %v427_v6  ;;  %v577_v5 = vld [vmem:[#allocation3 + $0x8] sm:$0xff]  ;;  %v580_v6 = vld [vmem:[#allocation3 + $0x20] sm:$0xff] }
 0x114   :  { %v410_v15 = vsel %vm408_vm2, %v405_v56, %v406_v7  ;;  %v4199_v18 = vadd.f32 %v431_v14, %v418_v4  ;;  %v578_v14 = vld [vmem:[#allocation3 + $0x10] sm:$0xff] }
 0x115   :  { %v415_v19 = vmul.f32 %v4192_v8, %v410_v15  ;;  %v314_v21 = vpop.f32.mrb[6].mxu0 }
 0x116   :  { %v407_v24 = vrot.slane %v314_v21, 7  ;;  %v316_v27 = vpop.f32.mrb[7].mxu0  ;;  %v448_v43 = vmul.f32 %v4199_v18, %v4199_v18 }
 0x117   :  { %v419_v28 = vadd.f32 %v415_v19, %v310_v9  ;;  %v576_v9 = vld [vmem:[#allocation3] sm:$0xff]  ;;  %v581_v19 = vld [vmem:[#allocation3 + $0x28] sm:$0xff] }
 0x118   :  { %v412_v30 = vsel %vm408_vm2, %v407_v24, %v404_v54  ;;  %v409_v31 = vsel %vm408_vm2, %v406_v7, %v407_v24  ;;  %v3408_v7 = vpack.c.bf16 %v580_v6, %v577_v5  ;;  %v3440_v21 = vpack.c.bf16 %v581_v19, %v578_v14  ;;  %v583_v24 = vld [vmem:[#allocation3 + $0x38] sm:$0xff]  ;;  %v602_v5 = vld [vmem:[#allocation3 + $0xd0] sm:$0xff] }
 0x119   :  { %v4212_v33 = vadd.f32 %v426_v10, %v419_v28  ;;  %v413_v34 = vmul.f32 %v4203_v22, %v412_v30  ;;  %v420_v35 = vadd.f32 %v409_v31, %v316_v27  ;;  %v579_v10 = vld [vmem:[#allocation3 + $0x18] sm:$0xff]  ;;  %v586_v27 = vld [vmem:[#allocation3 + $0x50] sm:$0xff]  ;;  %v585_v31 = vld [vmem:[#allocation3 + $0x48] sm:$0xff] }
 0x11a   :  { %v3410_v15 = vpack.c.bf16 %v579_v10, %v576_v9  ;;  %3409 = vmatprep.subr.bf16.mxu1 %v3408_v7  ;;  %3441 = vmatprep.subr.bf16.mxu0 %v3440_v21  ;;  %v3412_v28 = vpack.c.bf16 %v586_v27, %v583_v24  ;;  %v582_v30 = vld [vmem:[#allocation3 + $0x30] sm:$0xff]  ;;  %v605_v7 = vld [vmem:[#allocation3 + $0xe8] sm:$0xff]  ;;  %v607_v10 = vld [vmem:[#allocation3 + $0xf8] sm:$0xff] }
 0x11b   :  { %v417_v39 = vadd.f32 %v413_v34, %v298_v45  ;;  %v4216_v41 = vadd.f32 %v433_v37, %v420_v35  ;;  %v449_v47 = vmul.f32 %v4212_v33, %v4212_v33  ;;  %v584_v34 = vld [vmem:[#allocation3 + $0x40] sm:$0xff]  ;;  %v3414_v35 = vpack.c.bf16 %v585_v31, %v582_v30  ;;  %v587_v37 = vld [vmem:[#allocation3 + $0x58] sm:$0xff]  ;;  %v610_v14 = vld [vmem:[#allocation3 + $0x110] sm:$0xff] }
 0x11c   :  { %3411 = vmatpush1.bf16.msra.mxu1 %v3410_v15  ;;  %v3456_v9 = vpack.c.bf16 %v605_v7, %v602_v5  ;;  %v3428_v15 = vpack.c.bf16 %v610_v14, %v607_v10  ;;  %v606_v19 = vld [vmem:[#allocation3 + $0xf0] sm:$0xff]  ;;  %v608_v24 = vld [vmem:[#allocation3 + $0x100] sm:$0xff]  ;;  %v613_v31 = vld [vmem:[#allocation3 + $0x128] sm:$0xff]  ;;  %v4239_v5 = vsub.s32 0, %v4172_v40  ;;  %v4243_v7 = vsub.s32 1, %v4172_v40 }
 0x11d   :  { %v4218_v42 = vadd.f32 %v428_v55, %v417_v39  ;;  %v450_v51 = vmul.f32 %v4216_v41, %v4216_v41  ;;  %3413 = vmatprep.subr.bf16.mxu1 %v3412_v28  ;;  %v3444_v39 = vpack.c.bf16 %v587_v37, %v584_v34  ;;  %v611_v28 = vld [vmem:[#allocation3 + $0x118] sm:$0xff]  ;;  %v616_v34 = vld [vmem:[#allocation3 + $0x140] sm:$0xff] }
 0x11e   :  { %v3460_v30 = vpack.c.bf16 %v611_v28, %v608_v24  ;;  %v612_v37 = vld [vmem:[#allocation3 + $0x120] sm:$0xff] }
 0x11f   :  { %v447_v44 = vmul.f32 %v4218_v42, %v4218_v42  ;;  %v438_v46 = vadd.f32 %v4199_v18, %v4218_v42  ;;  %v96_v10 = vld [vmem:[%s4975_s8] sm:$0x3] }
 0x120   :  { %3415 = vmatpush1.bf16.msra.mxu1 %v3414_v35  ;;  %v3432_v35 = vpack.c.bf16 %v616_v34, %v613_v31 }
 0x121   :  { %v439_v48 = vadd.f32 %v438_v46, %v4212_v33  ;;  %v451_v49 = vadd.f32 %v448_v43, %v447_v44  ;;  %v589_v43 = vld [vmem:[#allocation3 + $0x68] sm:$0xff]  ;;  %v592_v44 = vld [vmem:[#allocation3 + $0x80] sm:$0xff] }
 0x122   :  { %v3416_v46 = vpack.c.bf16 %v592_v44, %v589_v43  ;;  %v614_v43 = vld [vmem:[#allocation3 + $0x130] sm:$0xff] }
 0x123   :  { %v440_v45 = vadd.f32 %v439_v48, %v4216_v41  ;;  %v452_v52 = vadd.f32 %v451_v49, %v449_v47  ;;  %v588_v47 = vld [vmem:[#allocation3 + $0x60] sm:$0xff]  ;;  %v591_v48 = vld [vmem:[#allocation3 + $0x78] sm:$0xff]  ;;  %v590_v49 = vld [vmem:[#allocation3 + $0x70] sm:$0xff] }
 0x124   :  { %3417 = vmatprep.subr.bf16.mxu1 %v3416_v46  ;;  %v617_v46 = vld [vmem:[#allocation3 + $0x148] sm:$0xff] }
 0x125   :  { %v441_v53 = vrot.slane %v440_v45, 4  ;;  %v453_v54 = vadd.f32 %v452_v52, %v450_v51  ;;  %v593_v51 = vld [vmem:[#allocation3 + $0x88] sm:$0xff] }
 0x126   :  { %v3448_v52 = vpack.c.bf16 %v593_v51, %v590_v49  ;;  %v3464_v49 = vpack.c.bf16 %v617_v46, %v614_v43  ;;  %v618_v51 = vld [vmem:[#allocation3 + $0x150] sm:$0xff]  ;;  %v965_v46 = vmul.f32 %v4072_v12, %v4072_v12 }
 0x127   :  { %v442_v55 = vadd.f32 %v441_v53, %v440_v45  ;;  %v454_v56 = vrot.slane %v453_v54, 4  ;;  %v3418_v45 = vpack.c.bf16 %v591_v48, %v588_v47  ;;  %v595_v53 = vld [vmem:[#allocation3 + $0x98] sm:$0xff]  ;;  %v622_v48 = vld [vmem:[#allocation3 + $0x170] sm:$0xff] }
 0x128   :  { %v619_v47 = vld [vmem:[#allocation3 + $0x158] sm:$0xff] }
 0x129   :  { %v443_v57 = vrot.slane %v442_v55, 2  ;;  %v455_v58 = vadd.f32 %v454_v56, %v453_v54  ;;  %3419 = vmatpush1.bf16.msra.mxu1 %v3418_v45  ;;  %v598_v54 = vld [vmem:[#allocation3 + $0xb0] sm:$0xff]  ;;  %v3436_v45 = vpack.c.bf16 %v622_v48, %v619_v47 }
 0x12a   :  { %v594_v56 = vld [vmem:[#allocation3 + $0x90] sm:$0xff] }
 0x12b   :  { %v444_v59 = vadd.f32 %v443_v57, %v442_v55  ;;  %v456_v60 = vrot.slane %v455_v58, 2  ;;  %v3420_v55 = vpack.c.bf16 %v598_v54, %v595_v53  ;;  %v597_v57 = vld [vmem:[#allocation3 + $0xa8] sm:$0xff]  ;;  %v620_v53 = vld [vmem:[#allocation3 + $0x160] sm:$0xff] }
 0x12d   :  { %v445_v61 = vrot.slane %v444_v59, 1  ;;  %v457_v62 = vadd.f32 %v456_v60, %v455_v58  ;;  %v596_v58 = vld [vmem:[#allocation3 + $0xa0] sm:$0xff]  ;;  %v599_v60 = vld [vmem:[#allocation3 + $0xb8] sm:$0xff]  ;;  %3421 = vmatprep.subr.bf16.mxu1 %v3420_v55 }
 0x12e   :  { %v623_v55 = vld [vmem:[#allocation3 + $0x178] sm:$0xff] }
 0x12f   :  { %v458_v63 = vrot.slane %v457_v62, 1  ;;  %v446_v2 = vadd.f32 %v445_v61, %v444_v59  ;;  %v3422_v59 = vpack.c.bf16 %v597_v57, %v594_v56  ;;  %v3452_v61 = vpack.c.bf16 %v599_v60, %v596_v58 }
 0x130   :  { %v3468_v56 = vpack.c.bf16 %v623_v55, %v620_v53  ;;  %v963_v57 = vmul.f32 %v4019_v50, %v4019_v50  ;;  %v964_v58 = vmul.f32 %v4067_v11, %v4067_v11 }
 0x131   :  { %v459_v3 = vadd.f32 %v458_v63, %v457_v62  ;;  %3423 = vmatpush1.bf16.msra.mxu1 %v3422_v59  ;;  %v601_v62 = vld [vmem:[#allocation3 + $0xc8] sm:$0xff]  ;;  %v604_v63 = vld [vmem:[#allocation3 + $0xe0] sm:$0xff] }
 0x132   :  { %v3496_v59 = vpack.c.bf16 %v964_v58, %v963_v57 }
 0x133   :  { %v461_v4 = vsel %vm460_vm7, %v446_v2, %v459_v3  ;;  %v3424_v2 = vpack.c.bf16 %v604_v63, %v601_v62  ;;  %v600_v3 = vld [vmem:[#allocation3 + $0xc0] sm:$0xff] }
 0x134   :  { %2994 = vmatmul.mubr.f32.vlgmr.msra.gmra.mrb[8].mxu0 %v461_v4  ;;  %v603_v4 = vld [vmem:[#allocation3 + $0xd8] sm:$0xff] }
 0x135   :  { %3443 = vmatpush3.bf16.msra.mxu0 %v3440_v21  ;;  %v3426_v6 = vpack.c.bf16 %v603_v4, %v600_v3  ;;  %3425 = vmatprep.subr.bf16.mxu1 %v3424_v2  ;;  %v609_v21 = vld [vmem:[#allocation3 + $0x108] sm:$0xff] }
 0x136   :  { %3445 = vmatprep.subr.bf16.mxu0 %v3444_v39  ;;  %v3430_v27 = vpack.c.bf16 %v609_v21, %v606_v19 }
 0x137   :  { %3427 = vmatpush1.bf16.msra.mxu1 %v3426_v6 }
 0x138   :  { %3429 = vmatprep.subr.bf16.mxu1 %v3428_v15 }
 0x139   :  { %3447 = vmatpush3.bf16.msra.mxu0 %v3444_v39  ;;  %v615_v39 = vld [vmem:[#allocation3 + $0x138] sm:$0xff] }
 0x13a   :  { %3449 = vmatprep.subr.bf16.mxu0 %v3448_v52  ;;  %v3434_v44 = vpack.c.bf16 %v615_v39, %v612_v37 }
 0x13b   :  { %3431 = vmatpush1.bf16.msra.mxu1 %v3430_v27 }
 0x13c   :  { %3433 = vmatprep.subr.bf16.mxu1 %v3432_v35 }
 0x13d   :  { %3451 = vmatpush3.bf16.msra.mxu0 %v3448_v52  ;;  %v621_v52 = vld [vmem:[#allocation3 + $0x168] sm:$0xff] }
 0x13e   :  { %3453 = vmatprep.subr.bf16.mxu0 %v3452_v61  ;;  %v3438_v54 = vpack.c.bf16 %v621_v52, %v618_v51 }
 0x13f   :  { %3435 = vmatpush1.bf16.msra.mxu1 %v3434_v44 }
 0x140   :  { %3437 = vmatprep.subr.bf16.mxu1 %v3436_v45  ;;  %v3498_v45 = vpack.c.bf16 %v4067_v11, %v4019_v50  ;;  %v90_v50 = vld [vmem:[%s4968_s1] sm:$0x3] }
 0x141   :  { %3455 = vmatpush3.bf16.msra.mxu0 %v3452_v61 }
 0x142   :  { %3457 = vmatprep.subr.bf16.mxu0 %v3456_v9 }
 0x143   :  { %3439 = vmatpush1.bf16.msra.mxu1 %v3438_v54  ;;  %v3502_v54 = vpack.c.bf16 %v4081_v13, %v4072_v12 }
 0x144   :  { %3472 = vmatprep.subr.bf16.mxu1 %v3829_v17 }
 0x145   :  { %3459 = vmatpush3.bf16.msra.mxu0 %v3456_v9  ;;  %v95_v9 = vld [vmem:[%s4974_s7] sm:$0x3] }
 0x146   :  { %3461 = vmatprep.subr.bf16.mxu0 %v3460_v30  ;;  %v559_v19 = vrot.slane %v95_v9, %v4239_v5 }
 0x149   :  { %3463 = vmatpush3.bf16.msra.mxu0 %v3460_v30  ;;  %v567_v30 = vrot.slane %v96_v10, %v4239_v5 }
 0x14a   :  { %3465 = vmatprep.subr.bf16.mxu0 %v3464_v49 }
 0x14d   :  { %3467 = vmatpush3.bf16.msra.mxu0 %v3464_v49 }
 0x14e   :  { %3469 = vmatprep.subr.bf16.mxu0 %v3468_v56 }
 0x151   :  { %3471 = vmatpush3.bf16.msra.mxu0 %v3468_v56 }
 0x152   :  { %3497 = vmatprep.subr.bf16.mxu0 %v3496_v59 }
 0x207   :  { %v528_v60 = vpop.f32.mrb[8].mxu0 }
 0x208   :  { %v532_v61 = vmul.f32 0.001953125, %v528_v60  ;;  %v2995_v62 = vpop.f32.mrb[9].mxu0 }
 0x20a   :  { %v533_v63 = vmul.f32 %v532_v61, %v532_v61  ;;  %v541_v6 = vrot.slane %v532_v61, %v4239_v5 }
 0x20c   :  { %v535_v2 = vrot.slane %v533_v63, 7  ;;  %v542_v15 = vsub.f32 %v4218_v42, %v541_v6  ;;  %v543_v21 = vsub.f32 %v4199_v18, %v541_v6  ;;  %v544_v27 = vsub.f32 %v4212_v33, %v541_v6 }
 0x20d   :  { %v545_v28 = vsub.f32 %v4216_v41, %v541_v6  ;;  %v966_v18 = vmul.f32 %v4081_v13, %v4081_v13 }
 0x20e   :  { %v537_v3 = vsub.f32 %v532_v61, %v535_v2 }
 0x20f   :  { %v3500_v52 = vpack.c.bf16 %v966_v18, %v965_v46 }
 0x210   :  { %v546_v4 = vadd.f32 1e-05, %v537_v3 }
 0x212   :  { %3774 = vrsqrt.f32 %v546_v4 }
 0x21c   :  { %v3775_v14 = vpop.eup %3774 }
 0x21d   :  { %v551_v24 = vrot.slane %v3775_v14, %v4243_v7 }
 0x21f   :  { %v552_v31 = vmul.f32 %v551_v24, %v542_v15  ;;  %v553_v34 = vmul.f32 %v551_v24, %v543_v21  ;;  %v554_v35 = vmul.f32 %v551_v24, %v544_v27  ;;  %v555_v37 = vmul.f32 %v551_v24, %v545_v28 }
 0x221   :  { %v560_v39 = vmul.f32 %v559_v19, %v552_v31  ;;  %v561_v43 = vmul.f32 %v559_v19, %v553_v34  ;;  %v562_v44 = vmul.f32 %v559_v19, %v554_v35  ;;  %v563_v42 = vmul.f32 %v559_v19, %v555_v37 }
 0x223   :  { %v568_v47 = vadd.f32 %v567_v30, %v560_v39  ;;  %v569_v33 = vadd.f32 %v567_v30, %v561_v43  ;;  %v570_v48 = vadd.f32 %v567_v30, %v562_v44  ;;  %v571_v51 = vadd.f32 %v567_v30, %v563_v42 }
 0x225   :  { %v572_v41 = vmax.f32 %v568_v47, 0.0  ;;  %v573_v49 = vmax.f32 %v569_v33, 0.0  ;;  %v574_v53 = vmax.f32 %v570_v48, 0.0  ;;  %v575_v55 = vmax.f32 %v571_v51, 0.0 }
 0x227   :  { %689 = vmatmul.mubr.f32.vlgmr.msra.gmra.mrb[4].mxu1 %v572_v41  ;;  %3028 = vmatprep.mubr.f32.mxu0 %v572_v41 }
 0x228   :  { %3029 = vmatmul.mubr.f32.vlgmr.msra.gmra.mrb[10].mxu0 %v573_v49  ;;  %694 = vmatprep.mubr.f32.mxu1 %v3828_v0 }
 0x229   :  { %3031 = vmatprep.mubr.f32.mxu0 %v574_v53  ;;  %3499 = vmatpush1.bf16.msra.mxu0 %v3498_v45 }
 0x22a   :  { %3501 = vmatprep.subr.bf16.mxu0 %v3500_v52  ;;  %3474 = vmatpush3.bf16.msra.mxu1 %v4096_v16 }
 0x22b   :  { %695 = vmatmul.mubr.f32.gmra.mrb[6].mxu1 %v573_v49  ;;  %3475 = vmatprep.subr.bf16.mxu1 %v3829_v17 }
 0x22c   :  { %3032 = vmatmul.mubr.f32.gmra.mrb[12].mxu0 %v575_v55  ;;  %700 = vmatprep.mubr.f32.mxu1 %v3828_v0 }
 0x22d   :  { %3503 = vmatpush1.bf16.msra.mxu0 %v3502_v54  ;;  %1035 = vmatprep.mubr.f32.mxu0 %v3828_v0 }
 0x22e   :  { %3477 = vmatpush3.bf16.msra.mxu1 %v4107_v20 }
 0x22f   :  { %701 = vmatmul.mubr.f32.gmra.mrb[8].mxu1 %v574_v53  ;;  %3478 = vmatprep.subr.bf16.mxu1 %v3829_v17 }
 0x230   :  { %706 = vmatprep.mubr.f32.mxu1 %v3828_v0  ;;  %2652 = vmatmul.mubr.msk.f32.vlgmr.msra.gmra.mrb[14].mxu0 %vm967_vm8, %v90_v50 }
 0x231   :  { %1214 = vmatprep.mubr.f32.mxu0 %v3828_v0 }
 0x232   :  { %3480 = vmatpush3.bf16.msra.mxu1 %v4117_v23 }
 0x233   :  { %707 = vmatmul.mubr.f32.gmra.mrb[10].mxu1 %v575_v55  ;;  %3481 = vmatprep.subr.bf16.mxu1 %v3829_v17 }
 0x234   :  { %3066 = vmatprep.mubr.msk.f32.mxu1 %vm3830_vm0, %v3828_v0 }
 0x236   :  { %3483 = vmatpush3.bf16.msra.mxu1 %v4127_v26 }
 0x237   :  { %3484 = vmatprep.subr.bf16.mxu1 %v3829_v17 }
 0x23a   :  { %3486 = vmatpush3.bf16.msra.mxu1 %v4137_v29 }
 0x23b   :  { %3487 = vmatprep.subr.bf16.mxu1 %v3829_v17 }
 0x23e   :  { %3489 = vmatpush3.bf16.msra.mxu1 %v4147_v32 }
 0x23f   :  { %3490 = vmatprep.subr.bf16.mxu1 %v3829_v17 }
 0x242   :  { %3492 = vmatpush3.bf16.msra.mxu1 %v4160_v36 }
 0x243   :  { %3493 = vmatprep.subr.bf16.mxu1 %v3829_v17 }
 0x246   :  { %3495 = vmatpush3.bf16.msra.mxu1 %v4168_v38 }
 0x247   :  { %3504 = vmatprep.subr.bf16.mxu1 %v3829_v17 }
 0x2fa   :  { %v690_v11 = vpop.f32.mrb[4].mxu1 }
 0x2fb   :  { %v692_v12 = vpop.f32.mrb[5].mxu1  ;;  %v3030_v13 = vpop.f32.mrb[10].mxu0  ;;  %v798_v60 = vrot.slane %v690_v11, 7 }
 0x2fc   :  { %v815_v56 = vrot.slane %v3030_v13, 1  ;;  %v779_v57 = vpop.f32.mrb[11].mxu0 }
 0x2fd   :  { %v814_v58 = vrot.slane %v779_v57, 1 }
 0x2fe   :  { %v696_v59 = vpop.f32.mrb[6].mxu1 }
 0x2ff   :  { %v820_v61 = vsel %vm425_vm1, %v814_v58, %v815_v56  ;;  %v799_v62 = vrot.slane %v696_v59, 7  ;;  %v698_v63 = vpop.f32.mrb[7].mxu1  ;;  %v3033_v2 = vpop.f32.mrb[12].mxu0 }
 0x300   :  { %v817_v3 = vrot.slane %v3033_v2, 1  ;;  %v789_v4 = vpop.f32.mrb[13].mxu0 }
 0x301   :  { %v804_v6 = vsel %vm408_vm2, %v798_v60, %v799_v62  ;;  %v816_v9 = vrot.slane %v789_v4, 1 }
 0x302   :  { %v811_v10 = vadd.f32 %v804_v6, %v698_v63  ;;  %v821_v14 = vsel %vm425_vm1, %v817_v3, %v814_v58  ;;  %v702_v15 = vpop.f32.mrb[8].mxu1 }
 0x303   :  { %v819_v19 = vsel %vm425_vm1, %v815_v56, %v816_v9  ;;  %v800_v21 = vrot.slane %v702_v15, 7  ;;  %v704_v24 = vpop.f32.mrb[9].mxu1  ;;  %v818_v27 = vsel %vm425_vm1, %v816_v9, %v817_v3  ;;  %v1037_v28 = vpop.f32.mrb[14].mxu0  ;;  %v825_v45 = vmul.f32 %v4206_v25, %v821_v14  ;;  %v75_v14 = vld [vmem:[%s4971_s4 + $0x8] sm:$0xff] }
 0x304   :  { %v823_v30 = vmul.f32 %v4185_v1, %v819_v19  ;;  %v1039_v31 = vpop.f32.mrb[15].mxu0 }
 0x305   :  { %v803_v34 = vsel %vm408_vm2, %v799_v62, %v800_v21  ;;  %v1043_v35 = vrot.slane %v1039_v31, 6 }
 0x306   :  { %v4306_v37 = vadd.f32 %v823_v30, %v811_v10  ;;  %v808_v39 = vmul.f32 %v4192_v8, %v803_v34  ;;  %v708_v43 = vpop.f32.mrb[10].mxu1  ;;  %v74_v10 = vld [vmem:[%s4971_s4] sm:$0xff] }
 0x307   :  { %v801_v44 = vrot.slane %v708_v43, 7  ;;  %v710_v42 = vpop.f32.mrb[11].mxu1  ;;  %v4310_v46 = vsel %vm1045_vm9, %v1037_v28, %v1043_v35  ;;  %v77_v28 = vld [vmem:[%s4971_s4 + $0x18] sm:$0xff]  ;;  %v78_v34 = vld [vmem:[%s4971_s4 + $0x20] sm:$0xff]  ;;  %v79_v35 = vld [vmem:[%s4971_s4 + $0x28] sm:$0xff] }
 0x308   :  { %v812_v18 = vadd.f32 %v808_v39, %v704_v24  ;;  %v840_v54 = vmul.f32 %v4306_v37, %v4306_v37  ;;  %v4342_v24 = vpack.c.bf16 %v75_v14, %v74_v10  ;;  %v4364_v39 = vpack.c.bf16 %v79_v35, %v78_v34  ;;  %v80_v43 = vld [vmem:[%s4971_s4 + $0x30] sm:$0xff]  ;;  %v2664_v34 = vld [vmem:[%s4972_s5 + $0x1a0] sm:$0xff] }
 0x309   :  { %v805_v47 = vsel %vm408_vm2, %v801_v44, %v798_v60  ;;  %v802_v33 = vsel %vm408_vm2, %v800_v21, %v801_v44  ;;  %v81_v44 = vld [vmem:[%s4971_s4 + $0x38] sm:$0xff] }
 0x30a   :  { %v4316_v48 = vadd.f32 %v818_v27, %v812_v18  ;;  %v806_v41 = vmul.f32 %v4203_v22, %v805_v47  ;;  %v813_v49 = vadd.f32 %v802_v33, %v710_v42  ;;  %v76_v27 = vld [vmem:[%s4971_s4 + $0x10] sm:$0xff]  ;;  %v4374_v42 = vpack.c.bf16 %v81_v44, %v80_v43  ;;  %v82_v18 = vld [vmem:[%s4971_s4 + $0x40] sm:$0xff]  ;;  %v83_v47 = vld [vmem:[%s4971_s4 + $0x48] sm:$0xff] }
 0x30b   :  { %v4352_v31 = vpack.c.bf16 %v77_v28, %v76_v27  ;;  %v4384_v33 = vpack.c.bf16 %v83_v47, %v82_v18  ;;  %v2660_v44 = vld [vmem:[%s4972_s5 + $0x180] sm:$0xff]  ;;  %v2663_v18 = vld [vmem:[%s4972_s5 + $0x198] sm:$0xff] }
 0x30c   :  { %v810_v51 = vadd.f32 %v806_v41, %v692_v12  ;;  %v4320_v52 = vadd.f32 %v825_v45, %v813_v49  ;;  %v841_v11 = vmul.f32 %v4316_v48, %v4316_v48  ;;  %v84_v41 = vld [vmem:[%s4971_s4 + $0x50] sm:$0xff]  ;;  %v85_v49 = vld [vmem:[%s4971_s4 + $0x58] sm:$0xff] }
 0x30d   :  { %v4394_v45 = vpack.c.bf16 %v85_v49, %v84_v41  ;;  %v2667_v47 = vld [vmem:[%s4972_s5 + $0x1b8] sm:$0xff]  ;;  %v2670_v41 = vld [vmem:[%s4972_s5 + $0x1d0] sm:$0xff] }
 0x30e   :  { %v4322_v53 = vadd.f32 %v820_v61, %v810_v51  ;;  %v842_v57 = vmul.f32 %v4320_v52, %v4320_v52  ;;  %v86_v51 = vld [vmem:[%s4971_s4 + $0x60] sm:$0xff] }
 0x310   :  { %v839_v55 = vmul.f32 %v4322_v53, %v4322_v53  ;;  %v830_v50 = vadd.f32 %v4306_v37, %v4322_v53 }
 0x312   :  { %v831_v13 = vadd.f32 %v830_v50, %v4316_v48  ;;  %v843_v56 = vadd.f32 %v840_v54, %v839_v55  ;;  %v87_v54 = vld [vmem:[%s4971_s4 + $0x68] sm:$0xff]  ;;  %v88_v50 = vld [vmem:[%s4971_s4 + $0x70] sm:$0xff] }
 0x313   :  { %v4404_v55 = vpack.c.bf16 %v87_v54, %v86_v51  ;;  %v91_v54 = vld [vmem:[%s4969_s2] sm:$0xff] }
 0x314   :  { %v832_v12 = vadd.f32 %v831_v13, %v4320_v52  ;;  %v844_v58 = vadd.f32 %v843_v56, %v841_v11  ;;  %v89_v11 = vld [vmem:[%s4971_s4 + $0x78] sm:$0xff]  ;;  %v2662_v56 = vld [vmem:[%s4972_s5 + $0x190] sm:$0xff] }
 0x315   :  { %v4414_v13 = vpack.c.bf16 %v89_v11, %v88_v50  ;;  %v3530_v50 = vpack.c.bf16 %v2663_v18, %v2660_v44  ;;  %v3532_v11 = vpack.c.bf16 %v2670_v41, %v2667_v47  ;;  %v2694_v44 = vld [vmem:[%s4972_s5 + $0x290] sm:$0xff]  ;;  %v2689_v41 = vld [vmem:[%s4972_s5 + $0x268] sm:$0xff] }
 0x316   :  { %v833_v59 = vrot.slane %v832_v12, 4  ;;  %v845_v60 = vadd.f32 %v844_v58, %v842_v57  ;;  %v2668_v58 = vld [vmem:[%s4972_s5 + $0x1c0] sm:$0xff]  ;;  %v2686_v18 = vld [vmem:[%s4972_s5 + $0x250] sm:$0xff] }
 0x318   :  { %v834_v61 = vadd.f32 %v833_v59, %v832_v12  ;;  %v846_v62 = vrot.slane %v845_v60, 4  ;;  %v2665_v12 = vld [vmem:[%s4972_s5 + $0x1a8] sm:$0xff]  ;;  %v2671_v59 = vld [vmem:[%s4972_s5 + $0x1d8] sm:$0xff] }
 0x319   :  { %v3560_v57 = vpack.c.bf16 %v2665_v12, %v2662_v56  ;;  %v2666_v56 = vld [vmem:[%s4972_s5 + $0x1b0] sm:$0xff]  ;;  %v2669_v12 = vld [vmem:[%s4972_s5 + $0x1c8] sm:$0xff] }
 0x31a   :  { %v835_v63 = vrot.slane %v834_v61, 2  ;;  %v847_v2 = vadd.f32 %v846_v62, %v845_v60  ;;  %v3564_v60 = vpack.c.bf16 %v2671_v59, %v2668_v58  ;;  %v2676_v58 = vld [vmem:[%s4972_s5 + $0x200] sm:$0xff]  ;;  %v92_v59 = vld [vmem:[%s4969_s2 + $0x8] sm:$0xff] }
 0x31c   :  { %v836_v3 = vadd.f32 %v835_v63, %v834_v61  ;;  %v848_v4 = vrot.slane %v847_v2, 2  ;;  %v2677_v61 = vld [vmem:[%s4972_s5 + $0x208] sm:$0xff]  ;;  %v2680_v63 = vld [vmem:[%s4972_s5 + $0x220] sm:$0xff] }
 0x31e   :  { %v837_v6 = vrot.slane %v836_v3, 1  ;;  %v849_v9 = vadd.f32 %v848_v4, %v847_v2  ;;  %v2683_v2 = vld [vmem:[%s4972_s5 + $0x238] sm:$0xff] }
 0x320   :  { %v850_v15 = vrot.slane %v849_v9, 1  ;;  %v838_v19 = vadd.f32 %v837_v6, %v836_v3  ;;  %v3572_v3 = vpack.c.bf16 %v2683_v2, %v2680_v63  ;;  %v2679_v63 = vld [vmem:[%s4972_s5 + $0x218] sm:$0xff]  ;;  %v2682_v2 = vld [vmem:[%s4972_s5 + $0x230] sm:$0xff] }
 0x322   :  { %v851_v21 = vadd.f32 %v850_v15, %v849_v9 }
 0x324   :  { %v852_v30 = vsel %vm460_vm7, %v838_v19, %v851_v21 }
 0x325   :  { %3067 = vmatmul.mubr.f32.vlgmr.msra.gmra.mrb[12].mxu1 %v852_v30  ;;  %v2661_v30 = vld [vmem:[%s4972_s5 + $0x188] sm:$0xff] }
 0x326   :  { %3506 = vmatpush3.bf16.msra.mxu1 %v4342_v24  ;;  %3101 = vmatprep.mubr.msk.f32.mxu1 %vm3830_vm0, %v3828_v0  ;;  %v3528_v51 = vpack.c.bf16 %v2664_v34, %v2661_v30  ;;  %v2684_v30 = vld [vmem:[%s4972_s5 + $0x240] sm:$0xff]  ;;  %v2687_v34 = vld [vmem:[%s4972_s5 + $0x258] sm:$0xff] }
 0x327   :  { %3507 = vmatprep.subr.bf16.mxu1 %v3829_v17 }
 0x32a   :  { %3509 = vmatpush3.bf16.msra.mxu1 %v4352_v31 }
 0x32b   :  { %3510 = vmatprep.subr.bf16.mxu1 %v3829_v17 }
 0x32e   :  { %3512 = vmatpush3.bf16.msra.mxu1 %v4364_v39 }
 0x32f   :  { %3513 = vmatprep.subr.bf16.mxu1 %v3829_v17 }
 0x332   :  { %3515 = vmatpush3.bf16.msra.mxu1 %v4374_v42 }
 0x333   :  { %3516 = vmatprep.subr.bf16.mxu1 %v3829_v17 }
 0x336   :  { %3518 = vmatpush3.bf16.msra.mxu1 %v4384_v33 }
 0x337   :  { %3519 = vmatprep.subr.bf16.mxu1 %v3829_v17 }
 0x33a   :  { %3521 = vmatpush3.bf16.msra.mxu1 %v4394_v45 }
 0x33b   :  { %3522 = vmatprep.subr.bf16.mxu1 %v3829_v17 }
 0x33e   :  { %3524 = vmatpush3.bf16.msra.mxu1 %v4404_v55 }
 0x33f   :  { %3525 = vmatprep.subr.bf16.mxu1 %v3829_v17 }
 0x342   :  { %3527 = vmatpush3.bf16.msra.mxu1 %v4414_v13 }
 0x343   :  { %3561 = vmatprep.subr.bf16.mxu1 %v3560_v57 }
 0x345   :  { %3102 = vmatmul.mubr.f32.vlgmr.msra.gmra.mrb[14].mxu1 %v4310_v46  ;;  %v2674_v46 = vld [vmem:[%s4972_s5 + $0x1f0] sm:$0xff] }
 0x346   :  { %3563 = vmatpush3.bf16.msra.mxu1 %v3560_v57  ;;  %v3568_v62 = vpack.c.bf16 %v2677_v61, %v2674_v46  ;;  %v2673_v57 = vld [vmem:[%s4972_s5 + $0x1e8] sm:$0xff]  ;;  %v2672_v61 = vld [vmem:[%s4972_s5 + $0x1e0] sm:$0xff] }
 0x347   :  { %3565 = vmatprep.subr.bf16.mxu1 %v3564_v60  ;;  %v3536_v46 = vpack.c.bf16 %v2676_v58, %v2673_v57  ;;  %v2695_v58 = vld [vmem:[%s4972_s5 + $0x298] sm:$0xff] }
 0x34a   :  { %3567 = vmatpush3.bf16.msra.mxu1 %v3564_v60  ;;  %v3534_v60 = vpack.c.bf16 %v2669_v12, %v2666_v56  ;;  %v2700_v56 = vld [vmem:[%s4972_s5 + $0x2c0] sm:$0xff] }
 0x34b   :  { %3569 = vmatprep.subr.bf16.mxu1 %v3568_v62  ;;  %v2692_v12 = vld [vmem:[%s4972_s5 + $0x280] sm:$0xff] }
 0x34e   :  { %3571 = vmatpush3.bf16.msra.mxu1 %v3568_v62  ;;  %v2675_v62 = vld [vmem:[%s4972_s5 + $0x1f8] sm:$0xff] }
 0x34f   :  { %3573 = vmatprep.subr.bf16.mxu1 %v3572_v3 }
 0x352   :  { %3575 = vmatpush3.bf16.msra.mxu1 %v3572_v3  ;;  %v93_v3 = vld [vmem:[%s4969_s2 + $0x10] sm:$0xff] }
 0x3f8   :  { %v4443_v4 = vpop.f32.mrb[12].mxu1 }
 0x3f9   :  { %v3068_v6 = vpop.f32.mrb[13].mxu1 }
 0x3fa   :  { %v3538_v6 = vpack.c.bf16 %v2675_v62, %v2672_v61  ;;  %v2703_v62 = vld [vmem:[%s4972_s5 + $0x2d8] sm:$0xff] }
 0x418   :  { %v1113_v9 = vpop.f32.mrb[14].mxu1 }
 0x419   :  { %v1117_v10 = vmul.f32 0.001953125, %v1113_v9  ;;  %v3103_v14 = vpop.f32.mrb[15].mxu1  ;;  %v3540_v9 = vpack.c.bf16 %v2682_v2, %v2679_v63  ;;  %v2706_v63 = vld [vmem:[%s4972_s5 + $0x2f0] sm:$0xff] }
 0x41a   :  { %v2681_v14 = vld [vmem:[%s4972_s5 + $0x228] sm:$0xff]  ;;  %v2698_v2 = vld [vmem:[%s4972_s5 + $0x2b0] sm:$0xff] }
 0x41b   :  { %v1118_v15 = vmul.f32 %v1117_v10, %v1117_v10  ;;  %v1125_v35 = vsub.f32 0.0, %v1117_v10 }
 0x41d   :  { %v1120_v19 = vrot.slane %v1118_v15, 6  ;;  %v2685_v15 = vld [vmem:[%s4972_s5 + $0x248] sm:$0xff] }
 0x41f   :  { %v1122_v21 = vsub.f32 %v1117_v10, %v1120_v19  ;;  %v2678_v10 = vld [vmem:[%s4972_s5 + $0x210] sm:$0xff]  ;;  %v2688_v19 = vld [vmem:[%s4972_s5 + $0x260] sm:$0xff] }
 0x421   :  { %v1123_v27 = vadd.f32 1e-05, %v1122_v21  ;;  %v94_v21 = vld [vmem:[%s4969_s2 + $0x18] sm:$0xff] }
 0x423   :  { %3776 = vrsqrt.f32 %v1123_v27  ;;  %v3542_v27 = vpack.c.bf16 %v2681_v14, %v2678_v10  ;;  %v2705_v10 = vld [vmem:[%s4972_s5 + $0x2e8] sm:$0xff] }
 0x42d   :  { %v3777_v28 = vpop.eup %3776 }
 0x42e   :  { %v1127_v43 = vrot.slane %v3777_v28, 2  ;;  %v3544_v28 = vpack.c.bf16 %v2688_v19, %v2685_v15  ;;  %v2704_v19 = vld [vmem:[%s4972_s5 + $0x2e0] sm:$0xff] }
 0x430   :  { %v1129_v49 = vmul.f32 %v1127_v43, %v1125_v35  ;;  %v3546_v35 = vpack.c.bf16 %v2687_v34, %v2684_v30 }
 0x432   :  { %2654 = vmatprep.subr.msk.mxu0 %vm1045_vm9, %v1129_v49  ;;  %v2690_v49 = vld [vmem:[%s4972_s5 + $0x270] sm:$0xff] }
 0x433   :  { %2655 = vmatpush1.msk.msra.mxu0 %vm1045_vm9, %v1127_v43  ;;  %v2691_v43 = vld [vmem:[%s4972_s5 + $0x278] sm:$0xff] }
 0x434   :  { %2656 = vmatmul.mubr.msk.f32.vlgmr.msra.gmra.mrb[16].mxu0 %vm1133_vm10, %v91_v54  ;;  %3529 = vmatprep.subr.bf16.mxu0 %v3528_v51  ;;  %v3548_v47 = vpack.c.bf16 %v2694_v44, %v2691_v43  ;;  %v2693_v51 = vld [vmem:[%s4972_s5 + $0x288] sm:$0xff]  ;;  %v3576_v54 = vpack.c.bf16 %v2689_v41, %v2686_v18  ;;  %v4594_v41 = vld [vmem:[%s4976_s9] sm:$0x3] }
 0x435   :  { %1220 = vmatprep.mubr.f32.mxu0 %v3828_v0  ;;  %3531 = vmatpush1.bf16.msra.mxu0 %v3530_v50  ;;  %v3550_v50 = vpack.c.bf16 %v2693_v51, %v2690_v49 }
 0x436   :  { %3533 = vmatprep.subr.bf16.mxu0 %v3532_v11  ;;  %3577 = vmatprep.subr.bf16.mxu1 %v3576_v54  ;;  %v2697_v11 = vld [vmem:[%s4972_s5 + $0x2a8] sm:$0xff] }
 0x437   :  { %3579 = vmatpush3.bf16.msra.mxu1 %v3576_v54  ;;  %v3552_v57 = vpack.c.bf16 %v2700_v56, %v2697_v11  ;;  %v4602_v54 = vld [vmem:[%s4977_s10] sm:$0x3] }
 0x438   :  { %2657 = vmatmul.mubr.msk.f32.gmra.mrb[18].mxu0 %vm1133_vm10, %v92_v59  ;;  %v2696_v59 = vld [vmem:[%s4972_s5 + $0x2a0] sm:$0xff] }
 0x439   :  { %1226 = vmatprep.mubr.f32.mxu0 %v3828_v0  ;;  %3535 = vmatpush1.bf16.msra.mxu0 %v3534_v60  ;;  %v2699_v60 = vld [vmem:[%s4972_s5 + $0x2b8] sm:$0xff] }
 0x43a   :  { %3537 = vmatprep.subr.bf16.mxu0 %v3536_v46  ;;  %v3580_v46 = vpack.c.bf16 %v2695_v58, %v2692_v12  ;;  %v3554_v61 = vpack.c.bf16 %v2699_v60, %v2696_v59  ;;  %v958_v59 = vrot.slane %v4602_v54, %v4239_v5 }
 0x43c   :  { %2658 = vmatmul.mubr.msk.f32.gmra.mrb[20].mxu0 %vm1133_vm10, %v93_v3  ;;  %3581 = vmatprep.subr.bf16.mxu1 %v3580_v46  ;;  %v3556_v3 = vpack.c.bf16 %v2706_v63, %v2703_v62 }
 0x43d   :  { %1232 = vmatprep.mubr.f32.mxu0 %v3828_v0  ;;  %3539 = vmatpush1.bf16.msra.mxu0 %v3538_v6  ;;  %v2701_v6 = vld [vmem:[%s4972_s5 + $0x2c8] sm:$0xff] }
 0x43e   :  { %3541 = vmatprep.subr.bf16.mxu0 %v3540_v9  ;;  %3583 = vmatpush3.bf16.msra.mxu1 %v3580_v46  ;;  %v2702_v9 = vld [vmem:[%s4972_s5 + $0x2d0] sm:$0xff]  ;;  %v3584_v14 = vpack.c.bf16 %v2701_v6, %v2698_v2 }
 0x43f   :  { %v3558_v15 = vpack.c.bf16 %v2705_v10, %v2702_v9 }
 0x440   :  { %2659 = vmatmul.mubr.msk.f32.gmra.mrb[22].mxu0 %vm1133_vm10, %v94_v21  ;;  %3585 = vmatprep.subr.bf16.mxu1 %v3584_v14  ;;  %v2707_v21 = vld [vmem:[%s4972_s5 + $0x2f8] sm:$0xff] }
 0x441   :  { %3543 = vmatpush1.bf16.msra.mxu0 %v3542_v27  ;;  %1392 = vmatprep.mubr.f32.mxu0 %v3828_v0  ;;  %v3588_v27 = vpack.c.bf16 %v2707_v21, %v2704_v19 }
 0x442   :  { %3545 = vmatprep.subr.bf16.mxu0 %v3544_v28  ;;  %3587 = vmatpush3.bf16.msra.mxu1 %v3584_v14  ;;  %v923_v28 = vmul.f32 0.001953125, %v4443_v4  ;;  %v950_v4 = vrot.slane %v4594_v41, %v4239_v5  ;;  %v3789_v14 = vld [vmem:[%s4967_s0 + $0x8] sm:$0xff] }
 0x443   :  { %3589 = vmatprep.subr.bf16.mxu1 %v3588_v27 }
 0x444   :  { %v924_v30 = vmul.f32 %v923_v28, %v923_v28  ;;  %v932_v18 = vrot.slane %v923_v28, %v4239_v5 }
 0x445   :  { %3547 = vmatpush1.bf16.msra.mxu0 %v3546_v35 }
 0x446   :  { %3549 = vmatprep.subr.bf16.mxu0 %v3548_v47  ;;  %3591 = vmatpush3.bf16.msra.mxu1 %v3588_v27  ;;  %v926_v34 = vrot.slane %v924_v30, 7  ;;  %v933_v49 = vsub.f32 %v4322_v53, %v932_v18  ;;  %v934_v11 = vsub.f32 %v4306_v37, %v932_v18  ;;  %v3788_v53 = vld [vmem:[%s4967_s0] sm:$0xff]  ;;  %v935_v37 = vsub.f32 %v4316_v48, %v932_v18 }
 0x447   :  { %v936_v21 = vsub.f32 %v4320_v52, %v932_v18 }
 0x448   :  { %v928_v35 = vsub.f32 %v923_v28, %v926_v34 }
 0x449   :  { %3551 = vmatpush1.bf16.msra.mxu0 %v3550_v50  ;;  %v4607_v50 = vld [vmem:[%s4978_s11] sm:$0x7] }
 0x44a   :  { %3553 = vmatprep.subr.bf16.mxu0 %v3552_v57  ;;  %v937_v43 = vadd.f32 1e-05, %v928_v35  ;;  %v1250_v46 = vrot.slane %v4607_v50, %v4239_v5 }
 0x44c   :  { %3778 = vrsqrt.f32 %v937_v43 }
 0x44d   :  { %3555 = vmatpush1.bf16.msra.mxu0 %v3554_v61  ;;  %v100_v61 = vld [vmem:[%s4979_s12] sm:$0x7] }
 0x44e   :  { %3557 = vmatprep.subr.bf16.mxu0 %v3556_v3  ;;  %v1262_v10 = vrot.slane %v100_v61, %v4239_v5 }
 0x451   :  { %3559 = vmatpush1.bf16.msra.mxu0 %v3558_v15 }
 0x452   :  { %3592 = vmatprep.subr.bf16.mxu0 %v3829_v17 }
 0x456   :  { %v3779_v44 = vpop.eup %3778 }
 0x457   :  { %v942_v47 = vrot.slane %v3779_v44, %v4243_v7 }
 0x459   :  { %v943_v51 = vmul.f32 %v942_v47, %v933_v49  ;;  %v944_v12 = vmul.f32 %v942_v47, %v934_v11  ;;  %v945_v3 = vmul.f32 %v942_v47, %v935_v37  ;;  %v946_v34 = vmul.f32 %v942_v47, %v936_v21  ;;  %v3790_v49 = vld [vmem:[%s4967_s0 + $0x10] sm:$0xff]  ;;  %v3791_v47 = vld [vmem:[%s4967_s0 + $0x18] sm:$0xff] }
 0x45b   :  { %v951_v58 = vmul.f32 %v950_v4, %v943_v51  ;;  %v952_v2 = vmul.f32 %v950_v4, %v944_v12  ;;  %v953_v48 = vmul.f32 %v950_v4, %v945_v3  ;;  %v954_v18 = vmul.f32 %v950_v4, %v946_v34 }
 0x45d   :  { %v959_v6 = vadd.f32 %v958_v59, %v951_v58  ;;  %v960_v43 = vadd.f32 %v958_v59, %v952_v2  ;;  %v962_v3 = vadd.f32 %v958_v59, %v954_v18 }
 0x507   :  { %v1216_v56 = vpop.f32.mrb[16].mxu0 }
 0x508   :  { %v1239_v57 = vmul.f32 %v3788_v53, %v1216_v56  ;;  %v1218_v60 = vpop.f32.mrb[17].mxu0 }
 0x50a   :  { %v1243_v62 = vadd.f32 %v1239_v57, %v1218_v60  ;;  %v961_v57 = vadd.f32 %v958_v59, %v953_v48 }
 0x50b   :  { %v1222_v63 = vpop.f32.mrb[18].mxu0 }
 0x50c   :  { %v1251_v9 = vmul.f32 %v1250_v46, %v1243_v62  ;;  %v1240_v15 = vmul.f32 %v3789_v14, %v1222_v63  ;;  %v1224_v19 = vpop.f32.mrb[19].mxu0 }
 0x50e   :  { %v1255_v27 = vadd.f32 %v1251_v9, %v959_v6  ;;  %v1244_v28 = vadd.f32 %v1240_v15, %v1224_v19 }
 0x50f   :  { %v1228_v30 = vpop.f32.mrb[20].mxu0 }
 0x510   :  { %v1263_v35 = vadd.f32 %v1262_v10, %v1255_v27  ;;  %v1252_v44 = vmul.f32 %v1250_v46, %v1244_v28  ;;  %v1241_v51 = vmul.f32 %v3790_v49, %v1228_v30  ;;  %v1230_v11 = vpop.f32.mrb[21].mxu0 }
 0x512   :  { %v4629_v56 = vmax.f32 %v1263_v35, 0.0  ;;  %v1256_v12 = vadd.f32 %v1252_v44, %v960_v43  ;;  %v1245_v53 = vadd.f32 %v1241_v51, %v1230_v11 }
 0x513   :  { %v1234_v52 = vpop.f32.mrb[22].mxu0 }
 0x514   :  { %v1264_v58 = vadd.f32 %v1262_v10, %v1256_v12  ;;  %v1253_v60 = vmul.f32 %v1250_v46, %v1245_v53  ;;  %v1242_v61 = vmul.f32 %v3791_v47, %v1234_v52  ;;  %v1236_v37 = vpop.f32.mrb[23].mxu0  ;;  %1393 = vmatmul.mubr.f32.vlgmr.msra.gmra.mrb[24].mxu0 %v4629_v56  ;;  %3136 = vmatprep.mubr.f32.mxu1 %v4629_v56 }
 0x515   :  { %1398 = vmatprep.mubr.f32.mxu0 %v3828_v0  ;;  %3594 = vmatpush3.bf16.msra.mxu0 %v4096_v16 }
 0x516   :  { %v4638_v62 = vmax.f32 %v1264_v58, 0.0  ;;  %v1257_v63 = vadd.f32 %v1253_v60, %v961_v57  ;;  %v1246_v4 = vadd.f32 %v1242_v61, %v1236_v37  ;;  %3595 = vmatprep.subr.bf16.mxu0 %v3829_v17 }
 0x518   :  { %v1265_v2 = vadd.f32 %v1262_v10, %v1257_v63  ;;  %v1254_v6 = vmul.f32 %v1250_v46, %v1246_v4  ;;  %1399 = vmatmul.mubr.f32.gmra.mrb[26].mxu0 %v4638_v62  ;;  %3137 = vmatmul.mubr.f32.vlgmr.msra.gmra.mrb[16].mxu1 %v4638_v62 }
 0x519   :  { %1404 = vmatprep.mubr.f32.mxu0 %v3828_v0  ;;  %3597 = vmatpush3.bf16.msra.mxu0 %v4107_v20 }
 0x51a   :  { %v4645_v9 = vmax.f32 %v1265_v2, 0.0  ;;  %v1258_v14 = vadd.f32 %v1254_v6, %v962_v3  ;;  %3598 = vmatprep.subr.bf16.mxu0 %v3829_v17 }
 0x51c   :  { %v1266_v15 = vadd.f32 %v1262_v10, %v1258_v14  ;;  %1405 = vmatmul.mubr.f32.gmra.mrb[28].mxu0 %v4645_v9  ;;  %3139 = vmatprep.mubr.f32.mxu1 %v4645_v9 }
 0x51d   :  { %1410 = vmatprep.mubr.f32.mxu0 %v3828_v0  ;;  %3600 = vmatpush3.bf16.msra.mxu0 %v4117_v23 }
 0x51e   :  { %v4652_v59 = vmax.f32 %v1266_v15, 0.0  ;;  %3601 = vmatprep.subr.bf16.mxu0 %v3829_v17 }
 0x520   :  { %1411 = vmatmul.mubr.f32.gmra.mrb[30].mxu0 %v4652_v59  ;;  %3140 = vmatmul.mubr.f32.gmra.mrb[18].mxu1 %v4652_v59 }
 0x521   :  { %3603 = vmatpush3.bf16.msra.mxu0 %v4127_v26  ;;  %3174 = vmatprep.mubr.msk.f32.mxu0 %vm3830_vm0, %v3828_v0 }
 0x522   :  { %3604 = vmatprep.subr.bf16.mxu0 %v3829_v17  ;;  %1784 = vmatprep.mubr.f32.mxu1 %v3828_v0 }
 0x525   :  { %3606 = vmatpush3.bf16.msra.mxu0 %v4137_v29 }
 0x526   :  { %3607 = vmatprep.subr.bf16.mxu0 %v3829_v17 }
 0x529   :  { %3609 = vmatpush3.bf16.msra.mxu0 %v4147_v32 }
 0x52a   :  { %3610 = vmatprep.subr.bf16.mxu0 %v3829_v17 }
 0x52d   :  { %3612 = vmatpush3.bf16.msra.mxu0 %v4160_v36 }
 0x52e   :  { %3613 = vmatprep.subr.bf16.mxu0 %v3829_v17 }
 0x531   :  { %3615 = vmatpush3.bf16.msra.mxu0 %v4168_v38 }
 0x5e7   :  { %v1394_v46 = vpop.f32.mrb[24].mxu0 }
 0x5e8   :  { %v1396_v10 = vpop.f32.mrb[25].mxu0  ;;  %v1502_v27 = vrot.slane %v1394_v46, 7 }
 0x5eb   :  { %v1400_v19 = vpop.f32.mrb[26].mxu0  ;;  %v3138_v21 = vpop.f32.mrb[16].mxu1 }
 0x5ec   :  { %v1503_v28 = vrot.slane %v1400_v19, 7  ;;  %v1519_v30 = vrot.slane %v3138_v21, 1  ;;  %v1402_v48 = vpop.f32.mrb[27].mxu0  ;;  %v1483_v34 = vpop.f32.mrb[17].mxu1 }
 0x5ed   :  { %v1518_v35 = vrot.slane %v1483_v34, 1 }
 0x5ee   :  { %v1508_v43 = vsel %vm408_vm2, %v1502_v27, %v1503_v28 }
 0x5ef   :  { %v1515_v44 = vadd.f32 %v1508_v43, %v1402_v48  ;;  %v1524_v49 = vsel %vm425_vm1, %v1518_v35, %v1519_v30  ;;  %v1406_v51 = vpop.f32.mrb[28].mxu0 }
 0x5f0   :  { %v1504_v11 = vrot.slane %v1406_v51, 7  ;;  %v1408_v12 = vpop.f32.mrb[29].mxu0 }
 0x5f2   :  { %v1507_v53 = vsel %vm408_vm2, %v1503_v28, %v1504_v11 }
 0x5f3   :  { %v1512_v57 = vmul.f32 %v4192_v8, %v1507_v53  ;;  %v1412_v52 = vpop.f32.mrb[30].mxu0  ;;  %v3141_v18 = vpop.f32.mrb[18].mxu1 }
 0x5f4   :  { %v1505_v58 = vrot.slane %v1412_v52, 7  ;;  %v1521_v60 = vrot.slane %v3141_v18, 1  ;;  %v1414_v47 = vpop.f32.mrb[31].mxu0  ;;  %v1493_v61 = vpop.f32.mrb[19].mxu1 }
 0x5f5   :  { %v1516_v37 = vadd.f32 %v1512_v57, %v1408_v12  ;;  %v1520_v63 = vrot.slane %v1493_v61, 1 }
 0x5f6   :  { %v1509_v4 = vsel %vm408_vm2, %v1505_v58, %v1502_v27  ;;  %v1525_v2 = vsel %vm425_vm1, %v1521_v60, %v1518_v35  ;;  %v1506_v3 = vsel %vm408_vm2, %v1504_v11, %v1505_v58 }
 0x5f7   :  { %v1510_v6 = vmul.f32 %v4203_v22, %v1509_v4  ;;  %v1517_v14 = vadd.f32 %v1506_v3, %v1414_v47  ;;  %v1529_v15 = vmul.f32 %v4206_v25, %v1525_v2  ;;  %v1522_v46 = vsel %vm425_vm1, %v1520_v63, %v1521_v60 }
 0x5f8   :  { %v1523_v19 = vsel %vm425_vm1, %v1519_v30, %v1520_v63  ;;  %v4688_v21 = vadd.f32 %v1522_v46, %v1516_v37  ;;  %v1676_v46 = vld [vmem:[#allocation3 + $0x1a0] sm:$0xff] }
 0x5f9   :  { %v1514_v27 = vadd.f32 %v1510_v6, %v1396_v10  ;;  %v4690_v28 = vadd.f32 %v1529_v15, %v1517_v14  ;;  %v1527_v48 = vmul.f32 %v4185_v1, %v1523_v19  ;;  %v1673_v15 = vld [vmem:[#allocation3 + $0x188] sm:$0xff] }
 0x5fa   :  { %v1545_v10 = vmul.f32 %v4688_v21, %v4688_v21  ;;  %v3616_v19 = vpack.c.bf16 %v1676_v46, %v1673_v15  ;;  %v1694_v15 = vld [vmem:[#allocation3 + $0x230] sm:$0xff] }
 0x5fb   :  { %v4693_v34 = vadd.f32 %v1524_v49, %v1514_v27  ;;  %v4695_v35 = vadd.f32 %v1527_v48, %v1515_v44  ;;  %v1546_v49 = vmul.f32 %v4690_v28, %v4690_v28  ;;  %v1672_v27 = vld [vmem:[#allocation3 + $0x180] sm:$0xff]  ;;  %v1675_v48 = vld [vmem:[#allocation3 + $0x198] sm:$0xff] }
 0x5fc   :  { %3617 = vmatprep.subr.bf16.mxu1 %v3616_v19  ;;  %v1690_v19 = vld [vmem:[#allocation3 + $0x210] sm:$0xff] }
 0x5fd   :  { %v1543_v43 = vmul.f32 %v4693_v34, %v4693_v34  ;;  %v1534_v51 = vadd.f32 %v4695_v35, %v4693_v34  ;;  %v1544_v30 = vmul.f32 %v4695_v35, %v4695_v35 }
 0x5ff   :  { %v1535_v11 = vadd.f32 %v1534_v51, %v4688_v21  ;;  %v1547_v12 = vadd.f32 %v1544_v30, %v1543_v43  ;;  %v1674_v43 = vld [vmem:[#allocation3 + $0x190] sm:$0xff]  ;;  %v3618_v51 = vpack.c.bf16 %v1675_v48, %v1672_v27  ;;  %v1677_v30 = vld [vmem:[#allocation3 + $0x1a8] sm:$0xff]  ;;  %v1692_v48 = vld [vmem:[#allocation3 + $0x220] sm:$0xff] }
 0x600   :  { %v1693_v27 = vld [vmem:[#allocation3 + $0x228] sm:$0xff] }
 0x601   :  { %v1536_v44 = vadd.f32 %v1535_v11, %v4690_v28  ;;  %v1548_v53 = vadd.f32 %v1547_v12, %v1545_v10  ;;  %v3648_v11 = vpack.c.bf16 %v1677_v30, %v1674_v43  ;;  %3619 = vmatpush1.bf16.msra.mxu1 %v3618_v51  ;;  %v1679_v10 = vld [vmem:[#allocation3 + $0x1b8] sm:$0xff]  ;;  %v1682_v12 = vld [vmem:[#allocation3 + $0x1d0] sm:$0xff]  ;;  %v3630_v43 = vpack.c.bf16 %v1693_v27, %v1690_v19 }
 0x602   :  { %v1695_v51 = vld [vmem:[#allocation3 + $0x238] sm:$0xff]  ;;  %v1710_v27 = vld [vmem:[#allocation3 + $0x2b0] sm:$0xff] }
 0x603   :  { %v1537_v57 = vrot.slane %v1536_v44, 4  ;;  %v1549_v52 = vadd.f32 %v1548_v53, %v1546_v49  ;;  %3649 = vmatprep.subr.bf16.mxu0 %v3648_v11  ;;  %v3620_v49 = vpack.c.bf16 %v1682_v12, %v1679_v10  ;;  %v1681_v53 = vld [vmem:[#allocation3 + $0x1c8] sm:$0xff]  ;;  %v3660_v30 = vpack.c.bf16 %v1695_v51, %v1692_v48  ;;  %v1700_v10 = vld [vmem:[#allocation3 + $0x260] sm:$0xff]  ;;  %v1711_v19 = vld [vmem:[#allocation3 + $0x2b8] sm:$0xff] }
 0x604   :  { %v1715_v51 = vld [vmem:[#allocation3 + $0x2d8] sm:$0xff] }
 0x605   :  { %v1538_v18 = vadd.f32 %v1537_v57, %v1536_v44  ;;  %v1550_v58 = vrot.slane %v1549_v52, 4  ;;  %v1678_v44 = vld [vmem:[#allocation3 + $0x1b0] sm:$0xff]  ;;  %v1680_v57 = vld [vmem:[#allocation3 + $0x1c0] sm:$0xff]  ;;  %3621 = vmatprep.subr.bf16.mxu1 %v3620_v49 }
 0x606   :  { %v1696_v49 = vld [vmem:[#allocation3 + $0x240] sm:$0xff] }
 0x607   :  { %v1539_v60 = vrot.slane %v1538_v18, 2  ;;  %v1551_v47 = vadd.f32 %v1550_v58, %v1549_v52  ;;  %v3622_v52 = vpack.c.bf16 %v1681_v53, %v1678_v44  ;;  %v1699_v44 = vld [vmem:[#allocation3 + $0x258] sm:$0xff]  ;;  %v1698_v53 = vld [vmem:[#allocation3 + $0x250] sm:$0xff] }
 0x609   :  { %v1540_v61 = vadd.f32 %v1539_v60, %v1538_v18  ;;  %v1552_v37 = vrot.slane %v1551_v47, 2  ;;  %v1683_v18 = vld [vmem:[#allocation3 + $0x1d8] sm:$0xff]  ;;  %3623 = vmatpush1.bf16.msra.mxu1 %v3622_v52  ;;  %v1685_v60 = vld [vmem:[#allocation3 + $0x1e8] sm:$0xff] }
 0x60a   :  { %v3652_v58 = vpack.c.bf16 %v1683_v18, %v1680_v57  ;;  %v3634_v57 = vpack.c.bf16 %v1699_v44, %v1696_v49  ;;  %v1701_v52 = vld [vmem:[#allocation3 + $0x268] sm:$0xff]  ;;  %v1716_v44 = vld [vmem:[#allocation3 + $0x2e0] sm:$0xff] }
 0x60b   :  { %v1541_v63 = vrot.slane %v1540_v61, 1  ;;  %v1553_v4 = vadd.f32 %v1552_v37, %v1551_v47  ;;  %v1688_v47 = vld [vmem:[#allocation3 + $0x200] sm:$0xff]  ;;  %v3664_v18 = vpack.c.bf16 %v1701_v52, %v1698_v53  ;;  %v1717_v49 = vld [vmem:[#allocation3 + $0x2e8] sm:$0xff] }
 0x60c   :  { %v1684_v37 = vld [vmem:[#allocation3 + $0x1e0] sm:$0xff] }
 0x60d   :  { %v1554_v2 = vrot.slane %v1553_v4, 1  ;;  %v1542_v3 = vadd.f32 %v1541_v63, %v1540_v61  ;;  %v3624_v61 = vpack.c.bf16 %v1688_v47, %v1685_v60  ;;  %v1687_v63 = vld [vmem:[#allocation3 + $0x1f8] sm:$0xff]  ;;  %v1706_v60 = vld [vmem:[#allocation3 + $0x290] sm:$0xff] }
 0x60f   :  { %v1555_v6 = vadd.f32 %v1554_v2, %v1553_v4  ;;  %v1686_v4 = vld [vmem:[#allocation3 + $0x1f0] sm:$0xff]  ;;  %v3626_v2 = vpack.c.bf16 %v1687_v63, %v1684_v37  ;;  %3625 = vmatprep.subr.bf16.mxu1 %v3624_v61  ;;  %v1705_v37 = vld [vmem:[#allocation3 + $0x288] sm:$0xff]  ;;  %v1704_v63 = vld [vmem:[#allocation3 + $0x280] sm:$0xff] }
 0x610   :  { %v1702_v61 = vld [vmem:[#allocation3 + $0x270] sm:$0xff] }
 0x611   :  { %v1556_v14 = vsel %vm460_vm7, %v1542_v3, %v1555_v6  ;;  %v1689_v3 = vld [vmem:[#allocation3 + $0x208] sm:$0xff]  ;;  %3627 = vmatpush1.bf16.msra.mxu1 %v3626_v2  ;;  %v1707_v2 = vld [vmem:[#allocation3 + $0x298] sm:$0xff] }
 0x612   :  { %3175 = vmatmul.mubr.f32.vlgmr.msra.gmra.mrb[32].mxu0 %v1556_v14  ;;  %v3656_v6 = vpack.c.bf16 %v1689_v3, %v1686_v4  ;;  %v1691_v14 = vld [vmem:[#allocation3 + $0x218] sm:$0xff]  ;;  %v3638_v4 = vpack.c.bf16 %v1705_v37, %v1702_v61  ;;  %v3668_v3 = vpack.c.bf16 %v1707_v2, %v1704_v63 }
 0x613   :  { %3651 = vmatpush3.bf16.msra.mxu0 %v3648_v11  ;;  %v3628_v46 = vpack.c.bf16 %v1694_v15, %v1691_v14  ;;  %v1697_v11 = vld [vmem:[#allocation3 + $0x248] sm:$0xff]  ;;  %v1712_v14 = vld [vmem:[#allocation3 + $0x2c0] sm:$0xff] }
 0x614   :  { %3653 = vmatprep.subr.bf16.mxu0 %v3652_v58  ;;  %v3632_v12 = vpack.c.bf16 %v1700_v10, %v1697_v11 }
 0x615   :  { %3629 = vmatprep.subr.bf16.mxu1 %v3628_v46  ;;  %v1708_v46 = vld [vmem:[#allocation3 + $0x2a0] sm:$0xff] }
 0x616   :  { %3631 = vmatpush1.bf16.msra.mxu1 %v3630_v43  ;;  %v3642_v48 = vpack.c.bf16 %v1711_v19, %v1708_v46  ;;  %v1713_v43 = vld [vmem:[#allocation3 + $0x2c8] sm:$0xff] }
 0x617   :  { %3655 = vmatpush3.bf16.msra.mxu0 %v3652_v58  ;;  %3633 = vmatprep.subr.bf16.mxu1 %v3632_v12  ;;  %v1703_v58 = vld [vmem:[#allocation3 + $0x278] sm:$0xff]  ;;  %v3672_v11 = vpack.c.bf16 %v1713_v43, %v1710_v27  ;;  %v1714_v12 = vld [vmem:[#allocation3 + $0x2d0] sm:$0xff] }
 0x618   :  { %3657 = vmatprep.subr.bf16.mxu0 %v3656_v6  ;;  %v3636_v47 = vpack.c.bf16 %v1706_v60, %v1703_v58  ;;  %v3646_v53 = vpack.c.bf16 %v1717_v49, %v1714_v12 }
 0x61a   :  { %3635 = vmatpush1.bf16.msra.mxu1 %v3634_v57  ;;  %v1719_v57 = vld [vmem:[#allocation3 + $0x2f8] sm:$0xff] }
 0x61b   :  { %3659 = vmatpush3.bf16.msra.mxu0 %v3656_v6  ;;  %3637 = vmatprep.subr.bf16.mxu1 %v3636_v47  ;;  %v1709_v6 = vld [vmem:[#allocation3 + $0x2a8] sm:$0xff]  ;;  %v3676_v52 = vpack.c.bf16 %v1719_v57, %v1716_v44 }
 0x61c   :  { %3661 = vmatprep.subr.bf16.mxu0 %v3660_v30  ;;  %v3640_v15 = vpack.c.bf16 %v1712_v14, %v1709_v6  ;;  %v3792_v6 = vld [vmem:[%s4974_s7] sm:$0x3] }
 0x61d   :  { %v1654_v14 = vrot.slane %v3792_v6, %v4243_v7 }
 0x61e   :  { %3639 = vmatpush1.bf16.msra.mxu1 %v3638_v4 }
 0x61f   :  { %3663 = vmatpush3.bf16.msra.mxu0 %v3660_v30  ;;  %v1718_v30 = vld [vmem:[#allocation3 + $0x2f0] sm:$0xff]  ;;  %3641 = vmatprep.subr.bf16.mxu1 %v3640_v15 }
 0x620   :  { %3665 = vmatprep.subr.bf16.mxu0 %v3664_v18  ;;  %v3644_v10 = vpack.c.bf16 %v1718_v30, %v1715_v51 }
 0x622   :  { %3643 = vmatpush1.bf16.msra.mxu1 %v3642_v48  ;;  %v3793_v48 = vld [vmem:[%s4975_s8] sm:$0x3] }
 0x623   :  { %3667 = vmatpush3.bf16.msra.mxu0 %v3664_v18  ;;  %3645 = vmatprep.subr.bf16.mxu1 %v3644_v10 }
 0x624   :  { %3669 = vmatprep.subr.bf16.mxu0 %v3668_v3 }
 0x626   :  { %3647 = vmatpush1.bf16.msra.mxu1 %v3646_v53 }
 0x627   :  { %3671 = vmatpush3.bf16.msra.mxu0 %v3668_v3  ;;  %3680 = vmatprep.subr.bf16.mxu1 %v3829_v17 }
 0x628   :  { %3673 = vmatprep.subr.bf16.mxu0 %v3672_v11 }
 0x62b   :  { %3675 = vmatpush3.bf16.msra.mxu0 %v3672_v11 }
 0x62c   :  { %3677 = vmatprep.subr.bf16.mxu0 %v3676_v52 }
 0x62f   :  { %3679 = vmatpush3.bf16.msra.mxu0 %v3676_v52 }
 0x630   :  { %3712 = vmatprep.subr.bf16.mxu0 %v3829_v17 }
 0x6e5   :  { %v1623_v18 = vpop.f32.mrb[32].mxu0 }
 0x6e6   :  { %v1627_v58 = vmul.f32 0.001953125, %v1623_v18  ;;  %v3176_v60 = vpop.f32.mrb[33].mxu0 }
 0x6e8   :  { %v1628_v47 = vmul.f32 %v1627_v58, %v1627_v58  ;;  %v1636_v4 = vrot.slane %v1627_v58, %v4239_v5 }
 0x6ea   :  { %v1630_v61 = vrot.slane %v1628_v47, 7  ;;  %v1637_v3 = vsub.f32 %v4693_v34, %v1636_v4  ;;  %v1638_v15 = vsub.f32 %v4695_v35, %v1636_v4  ;;  %v1639_v19 = vsub.f32 %v4688_v21, %v1636_v4 }
 0x6eb   :  { %v1640_v27 = vsub.f32 %v4690_v28, %v1636_v4  ;;  %v1662_v34 = vrot.slane %v3793_v48, %v4243_v7 }
 0x6ec   :  { %v1632_v37 = vsub.f32 %v1627_v58, %v1630_v61 }
 0x6ee   :  { %v1641_v63 = vadd.f32 1e-05, %v1632_v37 }
 0x6f0   :  { %3780 = vrsqrt.f32 %v1641_v63 }
 0x6fa   :  { %v3781_v2 = vpop.eup %3780 }
 0x6fb   :  { %v1646_v46 = vrot.slane %v3781_v2, %v4243_v7 }
 0x6fd   :  { %v1647_v43 = vmul.f32 %v1646_v46, %v1637_v3  ;;  %v1648_v51 = vmul.f32 %v1646_v46, %v1638_v15  ;;  %v1649_v30 = vmul.f32 %v1646_v46, %v1639_v19  ;;  %v1650_v11 = vmul.f32 %v1646_v46, %v1640_v27 }
 0x6ff   :  { %v1655_v10 = vmul.f32 %v1654_v14, %v1647_v43  ;;  %v1656_v12 = vmul.f32 %v1654_v14, %v1648_v51  ;;  %v1657_v49 = vmul.f32 %v1654_v14, %v1649_v30  ;;  %v1658_v35 = vmul.f32 %v1654_v14, %v1650_v11 }
 0x701   :  { %v1663_v44 = vadd.f32 %v1662_v34, %v1655_v10  ;;  %v1664_v53 = vadd.f32 %v1662_v34, %v1656_v12  ;;  %v1665_v57 = vadd.f32 %v1662_v34, %v1657_v49  ;;  %v1666_v28 = vadd.f32 %v1662_v34, %v1658_v35 }
 0x703   :  { %v1667_v21 = vmax.f32 %v1663_v44, 0.0  ;;  %v1668_v52 = vmax.f32 %v1664_v53, 0.0  ;;  %v1669_v18 = vmax.f32 %v1665_v57, 0.0  ;;  %v1670_v58 = vmax.f32 %v1666_v28, 0.0 }
 0x705   :  { %1785 = vmatmul.mubr.f32.vlgmr.msra.gmra.mrb[20].mxu1 %v1667_v21  ;;  %3209 = vmatprep.mubr.f32.mxu0 %v1667_v21 }
 0x706   :  { %3210 = vmatmul.mubr.f32.vlgmr.msra.gmra.mrb[34].mxu0 %v1668_v52  ;;  %1790 = vmatprep.mubr.f32.mxu1 %v3828_v0 }
 0x707   :  { %3212 = vmatprep.mubr.f32.mxu0 %v1669_v18  ;;  %3682 = vmatpush3.bf16.msra.mxu1 %v4096_v16  ;;  %v4767_v16 = vld [vmem:[%s4967_s0] sm:$0xff] }
 0x708   :  { %3683 = vmatprep.subr.bf16.mxu1 %v3829_v17  ;;  %3714 = vmatpush3.bf16.msra.mxu0 %v4342_v24 }
 0x709   :  { %1791 = vmatmul.mubr.f32.gmra.mrb[22].mxu1 %v1668_v52  ;;  %3715 = vmatprep.subr.bf16.mxu0 %v3829_v17 }
 0x70a   :  { %3213 = vmatmul.mubr.f32.gmra.mrb[36].mxu0 %v1670_v58  ;;  %1796 = vmatprep.mubr.f32.mxu1 %v3828_v0 }
 0x70b   :  { %3685 = vmatpush3.bf16.msra.mxu1 %v4107_v20  ;;  %3282 = vmatprep.mubr.msk.f32.mxu0 %vm3830_vm0, %v3828_v0  ;;  %v4772_v20 = vld [vmem:[%s4967_s0 + $0x8] sm:$0xff] }
 0x70c   :  { %3686 = vmatprep.subr.bf16.mxu1 %v3829_v17  ;;  %3717 = vmatpush3.bf16.msra.mxu0 %v4352_v31 }
 0x70d   :  { %1797 = vmatmul.mubr.f32.gmra.mrb[24].mxu1 %v1669_v18  ;;  %3718 = vmatprep.subr.bf16.mxu0 %v3829_v17 }
 0x70e   :  { %1802 = vmatprep.mubr.f32.mxu1 %v3828_v0 }
 0x70f   :  { %3688 = vmatpush3.bf16.msra.mxu1 %v4117_v23  ;;  %v2063_v23 = vmul.f32 %v4767_v16, %v4767_v16 }
 0x710   :  { %3689 = vmatprep.subr.bf16.mxu1 %v3829_v17  ;;  %3720 = vmatpush3.bf16.msra.mxu0 %v4364_v39 }
 0x711   :  { %1803 = vmatmul.mubr.f32.gmra.mrb[26].mxu1 %v1670_v58  ;;  %3721 = vmatprep.subr.bf16.mxu0 %v3829_v17 }
 0x712   :  { %3247 = vmatprep.mubr.msk.f32.mxu1 %vm3830_vm0, %v3828_v0 }
 0x713   :  { %3691 = vmatpush3.bf16.msra.mxu1 %v4127_v26  ;;  %v2064_v26 = vmul.f32 %v4772_v20, %v4772_v20 }
 0x714   :  { %3692 = vmatprep.subr.bf16.mxu1 %v3829_v17  ;;  %3723 = vmatpush3.bf16.msra.mxu0 %v4374_v42 }
 0x715   :  { %3724 = vmatprep.subr.bf16.mxu0 %v3829_v17 }
 0x717   :  { %3694 = vmatpush3.bf16.msra.mxu1 %v4137_v29  ;;  %v3704_v29 = vpack.c.bf16 %v2064_v26, %v2063_v23 }
 0x718   :  { %3695 = vmatprep.subr.bf16.mxu1 %v3829_v17  ;;  %3726 = vmatpush3.bf16.msra.mxu0 %v4384_v33 }
 0x719   :  { %3727 = vmatprep.subr.bf16.mxu0 %v3829_v17 }
 0x71b   :  { %3697 = vmatpush3.bf16.msra.mxu1 %v4147_v32 }
 0x71c   :  { %3698 = vmatprep.subr.bf16.mxu1 %v3829_v17  ;;  %3729 = vmatpush3.bf16.msra.mxu0 %v4394_v45 }
 0x71d   :  { %3730 = vmatprep.subr.bf16.mxu0 %v3829_v17 }
 0x71f   :  { %3700 = vmatpush3.bf16.msra.mxu1 %v4160_v36 }
 0x720   :  { %3701 = vmatprep.subr.bf16.mxu1 %v3829_v17  ;;  %3732 = vmatpush3.bf16.msra.mxu0 %v4404_v55 }
 0x721   :  { %3733 = vmatprep.subr.bf16.mxu0 %v3829_v17 }
 0x723   :  { %3703 = vmatpush3.bf16.msra.mxu1 %v4168_v38 }
 0x724   :  { %3735 = vmatpush3.bf16.msra.mxu0 %v4414_v13  ;;  %3705 = vmatprep.subr.bf16.mxu1 %v3704_v29 }
 0x725   :  { %3744 = vmatprep.subr.bf16.mxu0 %v3829_v17 }
 0x7d8   :  { %v1786_v32 = vpop.f32.mrb[20].mxu1 }
 0x7d9   :  { %v1788_v36 = vpop.f32.mrb[21].mxu1  ;;  %v3211_v38 = vpop.f32.mrb[34].mxu0  ;;  %v1894_v63 = vrot.slane %v1786_v32, 7 }
 0x7da   :  { %v1911_v60 = vrot.slane %v3211_v38, 1  ;;  %v1875_v47 = vpop.f32.mrb[35].mxu0 }
 0x7db   :  { %v1910_v61 = vrot.slane %v1875_v47, 1 }
 0x7dc   :  { %v1792_v37 = vpop.f32.mrb[22].mxu1 }
 0x7dd   :  { %v1916_v4 = vsel %vm425_vm1, %v1910_v61, %v1911_v60  ;;  %v1895_v2 = vrot.slane %v1792_v37, 7  ;;  %v1794_v3 = vpop.f32.mrb[23].mxu1  ;;  %v3214_v6 = vpop.f32.mrb[36].mxu0 }
 0x7de   :  { %v1913_v14 = vrot.slane %v3214_v6, 1  ;;  %v1885_v15 = vpop.f32.mrb[37].mxu0 }
 0x7df   :  { %v1900_v46 = vsel %vm408_vm2, %v1894_v63, %v1895_v2  ;;  %v1912_v19 = vrot.slane %v1885_v15, 1 }
 0x7e0   :  { %v1907_v27 = vadd.f32 %v1900_v46, %v1794_v3  ;;  %v1917_v48 = vsel %vm425_vm1, %v1913_v14, %v1910_v61  ;;  %v1798_v34 = vpop.f32.mrb[24].mxu1 }
 0x7e1   :  { %v1915_v43 = vsel %vm425_vm1, %v1911_v60, %v1912_v19  ;;  %v1896_v51 = vrot.slane %v1798_v34, 7  ;;  %v1800_v30 = vpop.f32.mrb[25].mxu1  ;;  %v1914_v11 = vsel %vm425_vm1, %v1912_v19, %v1913_v14  ;;  %v1921_v23 = vmul.f32 %v4206_v25, %v1917_v48  ;;  %v4821_v19 = vld [vmem:[%s4967_s0 + $0x10] sm:$0xff] }
 0x7e2   :  { %v1919_v10 = vmul.f32 %v4185_v1, %v1915_v43  ;;  %v2065_v43 = vmul.f32 %v4821_v19, %v4821_v19 }
 0x7e3   :  { %v1899_v12 = vsel %vm408_vm2, %v1895_v2, %v1896_v51 }
 0x7e4   :  { %v4791_v49 = vadd.f32 %v1919_v10, %v1907_v27  ;;  %v1904_v35 = vmul.f32 %v4192_v8, %v1899_v12  ;;  %v1804_v44 = vpop.f32.mrb[26].mxu1  ;;  %v4826_v27 = vld [vmem:[%s4967_s0 + $0x18] sm:$0xff]  ;;  %v3706_v12 = vpack.c.bf16 %v4772_v20, %v4767_v16 }
 0x7e5   :  { %v1897_v53 = vrot.slane %v1804_v44, 7  ;;  %v1806_v57 = vpop.f32.mrb[27].mxu1 }
 0x7e6   :  { %v1908_v21 = vadd.f32 %v1904_v35, %v1800_v30  ;;  %v1936_v32 = vmul.f32 %v4791_v49, %v4791_v49 }
 0x7e7   :  { %v1901_v52 = vsel %vm408_vm2, %v1897_v53, %v1894_v63  ;;  %v1898_v28 = vsel %vm408_vm2, %v1896_v51, %v1897_v53  ;;  %v2066_v51 = vmul.f32 %v4826_v27, %v4826_v27  ;;  %v3710_v53 = vpack.c.bf16 %v4826_v27, %v4821_v19 }
 0x7e8   :  { %v4798_v18 = vadd.f32 %v1914_v11, %v1908_v21  ;;  %v1902_v1 = vmul.f32 %v4203_v22, %v1901_v52  ;;  %v1909_v58 = vadd.f32 %v1898_v28, %v1806_v57  ;;  %v4841_v57 = vld [vmem:[%s4968_s1] sm:$0x3] }
 0x7e9   :  { %v3708_v35 = vpack.c.bf16 %v2066_v51, %v2065_v43 }
 0x7ea   :  { %v1906_v26 = vadd.f32 %v1902_v1, %v1788_v36  ;;  %v4802_v29 = vadd.f32 %v1921_v23, %v1909_v58  ;;  %v1937_v22 = vmul.f32 %v4798_v18, %v4798_v18 }
 0x7ec   :  { %v4804_v8 = vadd.f32 %v1916_v4, %v1906_v26  ;;  %v1938_v61 = vmul.f32 %v4802_v29, %v4802_v29 }
 0x7ee   :  { %v1935_v38 = vmul.f32 %v4804_v8, %v4804_v8  ;;  %v1926_v60 = vadd.f32 %v4791_v49, %v4804_v8 }
 0x7f0   :  { %v1927_v47 = vadd.f32 %v1926_v60, %v4798_v18  ;;  %v1939_v25 = vadd.f32 %v1936_v32, %v1935_v38 }
 0x7f2   :  { %v1928_v36 = vadd.f32 %v1927_v47, %v4802_v29  ;;  %v1940_v37 = vadd.f32 %v1939_v25, %v1937_v22  ;;  %v2351_v25 = vmul.f32 %v4645_v9, %v4645_v9 }
 0x7f4   :  { %v1929_v63 = vrot.slane %v1928_v36, 4  ;;  %v1941_v4 = vadd.f32 %v1940_v37, %v1938_v61  ;;  %v4879_v61 = vld [vmem:[%s4969_s2] sm:$0xff] }
 0x7f6   :  { %v1930_v2 = vadd.f32 %v1929_v63, %v1928_v36  ;;  %v1942_v3 = vrot.slane %v1941_v4, 4  ;;  %v3738_v36 = vpack.c.bf16 %v4638_v62, %v4629_v56  ;;  %v3742_v63 = vpack.c.bf16 %v4652_v59, %v4645_v9 }
 0x7f8   :  { %v1931_v6 = vrot.slane %v1930_v2, 2  ;;  %v1943_v14 = vadd.f32 %v1942_v3, %v1941_v4  ;;  %v4889_v4 = vld [vmem:[%s4969_s2 + $0x8] sm:$0xff]  ;;  %v4905_v3 = vld [vmem:[%s4969_s2 + $0x18] sm:$0xff] }
 0x7fa   :  { %v1932_v15 = vadd.f32 %v1931_v6, %v1930_v2  ;;  %v1944_v46 = vrot.slane %v1943_v14, 2  ;;  %v4897_v2 = vld [vmem:[%s4969_s2 + $0x10] sm:$0xff] }
 0x7fc   :  { %v1933_v48 = vrot.slane %v1932_v15, 1  ;;  %v1945_v34 = vadd.f32 %v1944_v46, %v1943_v14 }
 0x7fe   :  { %v1946_v30 = vrot.slane %v1945_v34, 1  ;;  %v1934_v11 = vadd.f32 %v1933_v48, %v1932_v15 }
 0x800   :  { %v1947_v10 = vadd.f32 %v1946_v30, %v1945_v34 }
 0x802   :  { %v1948_v44 = vsel %vm460_vm7, %v1934_v11, %v1947_v10  ;;  %v2046_v10 = vrot.slane %v4594_v41, %v4243_v7 }
 0x803   :  { %3248 = vmatmul.mubr.f32.vlgmr.msra.gmra.mrb[28].mxu1 %v1948_v44  ;;  %v2054_v44 = vrot.slane %v4602_v54, %v4243_v7 }
 0x804   :  { %3707 = vmatpush1.bf16.msra.mxu1 %v3706_v12  ;;  %2131 = vmatprep.mubr.f32.mxu1 %v3828_v0 }
 0x805   :  { %3709 = vmatprep.subr.bf16.mxu1 %v3708_v35 }
 0x808   :  { %3711 = vmatpush1.bf16.msra.mxu1 %v3710_v53 }
 0x80b   :  { %2708 = vmatmul.mubr.msk.f32.vlgmr.msra.gmra.mrb[30].mxu1 %vm967_vm8, %v4841_v57 }
 0x80c   :  { %2296 = vmatprep.mubr.f32.mxu1 %v3828_v0 }
 0x8d6   :  { %v2015_v21 = vpop.f32.mrb[28].mxu1 }
 0x8d7   :  { %v3249_v52 = vpop.f32.mrb[29].mxu1  ;;  %v2019_v6 = vmul.f32 0.001953125, %v2015_v21 }
 0x8d9   :  { %v2020_v14 = vmul.f32 %v2019_v6, %v2019_v6  ;;  %v2028_v43 = vrot.slane %v2019_v6, %v4239_v5  ;;  %v2332_v5 = vrot.slane %v4607_v50, %v4243_v7 }
 0x8db   :  { %v2022_v15 = vrot.slane %v2020_v14, 7  ;;  %v2029_v30 = vsub.f32 %v4804_v8, %v2028_v43  ;;  %v2030_v12 = vsub.f32 %v4791_v49, %v2028_v43  ;;  %v2031_v8 = vsub.f32 %v4798_v18, %v2028_v43 }
 0x8dc   :  { %v2032_v54 = vsub.f32 %v4802_v29, %v2028_v43 }
 0x8dd   :  { %v2024_v46 = vsub.f32 %v2019_v6, %v2022_v15 }
 0x8de   :  { %v2133_v28 = vpop.f32.mrb[30].mxu1 }
 0x8df   :  { %v2135_v1 = vpop.f32.mrb[31].mxu1  ;;  %v2033_v48 = vadd.f32 1e-05, %v2024_v46 }
 0x8e0   :  { %v2139_v58 = vrot.slane %v2135_v1, 6 }
 0x8e2   :  { %v2141_v23 = vsel %vm1045_vm9, %v2133_v28, %v2139_v58 }
 0x8e3   :  { %3283 = vmatmul.mubr.f32.vlgmr.msra.gmra.mrb[38].mxu0 %v2141_v23 }
 0x8e4   :  { %3746 = vmatpush3.bf16.msra.mxu0 %v4342_v24  ;;  %3317 = vmatprep.mubr.msk.f32.mxu0 %vm3830_vm0, %v3828_v0 }
 0x8e5   :  { %3747 = vmatprep.subr.bf16.mxu0 %v3829_v17 }
 0x8e8   :  { %3749 = vmatpush3.bf16.msra.mxu0 %v4352_v31 }
 0x8e9   :  { %3750 = vmatprep.subr.bf16.mxu0 %v3829_v17 }
 0x8ec   :  { %3752 = vmatpush3.bf16.msra.mxu0 %v4364_v39 }
 0x8ed   :  { %3753 = vmatprep.subr.bf16.mxu0 %v3829_v17 }
 0x8f0   :  { %3755 = vmatpush3.bf16.msra.mxu0 %v4374_v42 }
 0x8f1   :  { %3756 = vmatprep.subr.bf16.mxu0 %v3829_v17 }
 0x8f4   :  { %3758 = vmatpush3.bf16.msra.mxu0 %v4384_v33 }
 0x8f5   :  { %3759 = vmatprep.subr.bf16.mxu0 %v3829_v17 }
 0x8f8   :  { %3761 = vmatpush3.bf16.msra.mxu0 %v4394_v45  ;;  %v2350_v45 = vmul.f32 %v4638_v62, %v4638_v62 }
 0x8f9   :  { %3762 = vmatprep.subr.bf16.mxu0 %v3829_v17 }
 0x8fc   :  { %3764 = vmatpush3.bf16.msra.mxu0 %v4404_v55  ;;  %v2352_v55 = vmul.f32 %v4652_v59, %v4652_v59 }
 0x8fd   :  { %3765 = vmatprep.subr.bf16.mxu0 %v3829_v17  ;;  %v2349_v17 = vmul.f32 %v4629_v56, %v4629_v56 }
 0x8fe   :  { %v3740_v37 = vpack.c.bf16 %v2352_v55, %v2351_v25 }
 0x900   :  { %3767 = vmatpush3.bf16.msra.mxu0 %v4414_v13  ;;  %v3736_v13 = vpack.c.bf16 %v2350_v45, %v2349_v17 }
 0x9b6   :  { %v2208_v24 = vpop.f32.mrb[38].mxu0 }
 0x9b7   :  { %v2212_v31 = vmul.f32 0.001953125, %v2208_v24  ;;  %v3284_v39 = vpop.f32.mrb[39].mxu0 }
 0x9b9   :  { %v2213_v42 = vmul.f32 %v2212_v31, %v2212_v31  ;;  %v2220_v60 = vsub.f32 0.0, %v2212_v31 }
 0x9bb   :  { %v2215_v26 = vrot.slane %v2213_v42, 6 }
 0x9bd   :  { %v2217_v32 = vsub.f32 %v2212_v31, %v2215_v26 }
 0x9bf   :  { %v2218_v38 = vadd.f32 1e-05, %v2217_v32 }
 0x9c1   :  { %3782 = vrsqrt.f32 %v2218_v38 }
 0x9c2   :  { %3784 = vrsqrt.f32 %v2033_v48 }
 0x9cb   :  { %v3783_v33 = vpop.eup %3782 }
 0x9cc   :  { %v2222_v22 = vrot.slane %v3783_v33, 2  ;;  %v3785_v34 = vpop.eup %3784 }
 0x9cd   :  { %v2038_v51 = vrot.slane %v3785_v34, %v4243_v7 }
 0x9ce   :  { %v2224_v47 = vmul.f32 %v2222_v22, %v2220_v60 }
 0x9cf   :  { %v2039_v11 = vmul.f32 %v2038_v51, %v2029_v30  ;;  %v2040_v52 = vmul.f32 %v2038_v51, %v2030_v12  ;;  %v2041_v58 = vmul.f32 %v2038_v51, %v2031_v8  ;;  %v2042_v26 = vmul.f32 %v2038_v51, %v2032_v54 }
 0x9d0   :  { %2710 = vmatprep.subr.msk.mxu1 %vm1045_vm9, %v2224_v47 }
 0x9d1   :  { %2711 = vmatpush1.msk.msra.mxu1 %vm1045_vm9, %v2222_v22  ;;  %v2048_v24 = vmul.f32 %v2046_v10, %v2040_v52  ;;  %v2049_v18 = vmul.f32 %v2046_v10, %v2041_v58  ;;  %v2050_v55 = vmul.f32 %v2046_v10, %v2042_v26 }
 0x9d2   :  { %2712 = vmatmul.mubr.msk.f32.vlgmr.msra.gmra.mrb[32].mxu1 %vm1133_vm10, %v4879_v61  ;;  %3737 = vmatprep.subr.bf16.mxu1 %v3736_v13 }
 0x9d3   :  { %3739 = vmatpush1.bf16.msra.mxu1 %v3738_v36  ;;  %2302 = vmatprep.mubr.f32.mxu1 %v3828_v0  ;;  %v2056_v32 = vadd.f32 %v2054_v44, %v2048_v24  ;;  %v2057_v47 = vadd.f32 %v2054_v44, %v2049_v18 }
 0x9d4   :  { %3741 = vmatprep.subr.bf16.mxu1 %v3740_v37  ;;  %v2058_v37 = vadd.f32 %v2054_v44, %v2050_v55 }
 0x9d6   :  { %2713 = vmatmul.mubr.msk.f32.gmra.mrb[34].mxu1 %vm1133_vm10, %v4889_v4 }
 0x9d7   :  { %3743 = vmatpush1.bf16.msra.mxu1 %v3742_v63  ;;  %2308 = vmatprep.mubr.f32.mxu1 %v3828_v0 }
 0x9da   :  { %2714 = vmatmul.mubr.msk.f32.gmra.mrb[36].mxu1 %vm1133_vm10, %v4897_v2 }
 0x9db   :  { %2314 = vmatprep.mubr.f32.mxu1 %v3828_v0 }
 0x9de   :  { %2715 = vmatmul.mubr.msk.f32.gmra.mrb[38].mxu1 %vm1133_vm10, %v4905_v3 }
 0x9df   :  { %2417 = vmatprep.mubr.f32.mxu1 %v3828_v0 }
 0x9e2   :  { %2716 = vmatmul.mubr.msk.f32.vlgmr.msra.gmra.mrb[40].mxu1 %vm967_vm8, %v4841_v57  ;;  %v2047_v57 = vmul.f32 %v2046_v10, %v2039_v11 }
 0x9e3   :  { %2582 = vmatprep.mubr.f32.mxu1 %v3828_v0 }
 0x9e4   :  { %v2055_v41 = vadd.f32 %v2054_v44, %v2047_v57  ;;  %v2617_v44 = vsub.s32 2, %v4172_v40  ;;  %v3799_v57 = vld [vmem:[%s4979_s12] sm:$0x7] }
 0x9e6   :  { %v2630_v40 = vrot.slane %v3799_v57, %v2617_v44 }
 0xaa5   :  { %v2298_v35 = vpop.f32.mrb[32].mxu1 }
 0xaa6   :  { %v2321_v53 = vmul.f32 %v2298_v35, %v4767_v16  ;;  %v2300_v21 = vpop.f32.mrb[33].mxu1 }
 0xaa8   :  { %v2325_v28 = vadd.f32 %v2321_v53, %v2300_v21 }
 0xaa9   :  { %v2304_v1 = vpop.f32.mrb[34].mxu1 }
 0xaaa   :  { %v2333_v23 = vmul.f32 %v2332_v5, %v2325_v28  ;;  %v2322_v49 = vmul.f32 %v2304_v1, %v4772_v20  ;;  %v2306_v31 = vpop.f32.mrb[35].mxu1 }
 0xaac   :  { %v2337_v16 = vadd.f32 %v2333_v23, %v2055_v41  ;;  %v2326_v39 = vadd.f32 %v2322_v49, %v2306_v31 }
 0xaad   :  { %v2310_v42 = vpop.f32.mrb[36].mxu1 }
 0xaae   :  { %v2334_v50 = vmul.f32 %v2332_v5, %v2326_v39  ;;  %v2323_v38 = vmul.f32 %v2310_v42, %v4821_v19  ;;  %v2312_v33 = vpop.f32.mrb[37].mxu1 }
 0xab0   :  { %v2338_v60 = vadd.f32 %v2334_v50, %v2056_v32  ;;  %v2327_v22 = vadd.f32 %v2323_v38, %v2312_v33 }
 0xab1   :  { %v2316_v45 = vpop.f32.mrb[38].mxu1 }
 0xab2   :  { %v2335_v17 = vmul.f32 %v2332_v5, %v2327_v22  ;;  %v2324_v20 = vmul.f32 %v2316_v45, %v4826_v27  ;;  %v2318_v13 = vpop.f32.mrb[39].mxu1 }
 0xab4   :  { %v2339_v29 = vadd.f32 %v2335_v17, %v2057_v47  ;;  %v2328_v25 = vadd.f32 %v2324_v20, %v2318_v13 }
 0xab5   :  { %v2419_v36 = vpop.f32.mrb[40].mxu1 }
 0xab6   :  { %v2336_v63 = vmul.f32 %v2332_v5, %v2328_v25  ;;  %v2421_v6 = vpop.f32.mrb[41].mxu1 }
 0xab7   :  { %v2425_v14 = vrot.slane %v2421_v6, 6 }
 0xab8   :  { %v2340_v15 = vadd.f32 %v2336_v63, %v2058_v37 }
 0xab9   :  { %v2427_v19 = vsel %vm1045_vm9, %v2419_v36, %v2425_v14 }
 0xaba   :  { %3318 = vmatmul.mubr.f32.vlgmr.msra.gmra.mrb[40].mxu0 %v2427_v19 }
 0xb8d   :  { %v2494_v46 = vpop.f32.mrb[40].mxu0 }
 0xb8e   :  { %v2498_v48 = vmul.f32 0.001953125, %v2494_v46  ;;  %v3319_v34 = vpop.f32.mrb[41].mxu0 }
 0xb90   :  { %v2499_v43 = vmul.f32 %v2498_v48, %v2498_v48  ;;  %v2506_v10 = vsub.f32 0.0, %v2498_v48 }
 0xb92   :  { %v2501_v51 = vrot.slane %v2499_v43, 6 }
 0xb94   :  { %v2503_v30 = vsub.f32 %v2498_v48, %v2501_v51 }
 0xb96   :  { %v2504_v27 = vadd.f32 1e-05, %v2503_v30 }
 0xb98   :  { %3786 = vrsqrt.f32 %v2504_v27 }
 0xba2   :  { %v3787_v11 = vpop.eup %3786 }
 0xba3   :  { %v2508_v12 = vrot.slane %v3787_v11, 2 }
 0xba5   :  { %v2510_v35 = vmul.f32 %v2508_v12, %v2506_v10 }
 0xba7   :  { %2718 = vmatprep.subr.msk.mxu1 %vm1045_vm9, %v2510_v35 }
 0xba8   :  { %2719 = vmatpush1.msk.msra.mxu1 %vm1045_vm9, %v2508_v12 }
 0xba9   :  { %2720 = vmatmul.mubr.msk.f32.vlgmr.msra.gmra.mrb[42].mxu1 %vm1133_vm10, %v4879_v61 }
 0xbaa   :  { %2588 = vmatprep.mubr.f32.mxu1 %v3828_v0 }
 0xbad   :  { %2721 = vmatmul.mubr.msk.f32.gmra.mrb[44].mxu1 %vm1133_vm10, %v4889_v4  ;;  %v2344_v4 = vrot.slane %v3799_v57, %v4243_v7 }
 0xbae   :  { %2594 = vmatprep.mubr.f32.mxu1 %v3828_v0 }
 0xbaf   :  { %v2346_v49 = vadd.f32 %v2344_v4, %v2338_v60  ;;  %v2348_v22 = vadd.f32 %v2344_v4, %v2340_v15 }
 0xbb1   :  { %2722 = vmatmul.mubr.msk.f32.gmra.mrb[46].mxu1 %vm1133_vm10, %v4897_v2  ;;  %v3800_v2 = vld [vmem:[%s4978_s11] sm:$0x7] }
 0xbb2   :  { %2600 = vmatprep.mubr.f32.mxu1 %v3828_v0  ;;  %v2618_v0 = vrot.slane %v3800_v2, %v2617_v44 }
 0xbb5   :  { %2723 = vmatmul.mubr.msk.f32.gmra.mrb[48].mxu1 %vm1133_vm10, %v4905_v3  ;;  %v2345_v3 = vadd.f32 %v2344_v4, %v2337_v16 }
 0xc7c   :  { %v2584_v53 = vpop.f32.mrb[42].mxu1 }
 0xc7d   :  { %v2607_v61 = vmul.f32 %v2584_v53, %v4629_v56  ;;  %v2586_v21 = vpop.f32.mrb[43].mxu1 }
 0xc7f   :  { %v2611_v5 = vadd.f32 %v2607_v61, %v2586_v21 }
 0xc80   :  { %v2590_v52 = vpop.f32.mrb[44].mxu1 }
 0xc81   :  { %v2619_v8 = vmul.f32 %v2618_v0, %v2611_v5  ;;  %v2608_v28 = vmul.f32 %v2590_v52, %v4638_v62  ;;  %v2592_v56 = vpop.f32.mrb[45].mxu1  ;;  %v2347_v62 = vadd.f32 %v2344_v4, %v2339_v29 }
 0xc83   :  { %v2623_v1 = vadd.f32 %v2619_v8, %v2345_v3  ;;  %v2612_v58 = vadd.f32 %v2608_v28, %v2592_v56 }
 0xc84   :  { %v2596_v41 = vpop.f32.mrb[46].mxu1 }
 0xc85   :  { %v2631_v23 = vadd.f32 %v2630_v40, %v2623_v1  ;;  %v2620_v7 = vmul.f32 %v2618_v0, %v2612_v58  ;;  %v2609_v24 = vmul.f32 %v2596_v41, %v4645_v9  ;;  %v2598_v31 = vpop.f32.mrb[47].mxu1 }
 0xc87   :  { %v2635_v54 = vmax.f32 %v2631_v23, 0.0  ;;  %v2624_v39 = vadd.f32 %v2620_v7, %v2346_v49  ;;  %v2613_v42 = vadd.f32 %v2609_v24, %v2598_v31 }
 0xc88   :  { %v2602_v26 = vpop.f32.mrb[48].mxu1 }
 0xc89   :  { %2639 = vst [vmem:[%s4980_s13] sm:$0xff] %v2635_v54  ;;  %v2632_v16 = vadd.f32 %v2630_v40, %v2624_v39  ;;  %v2621_v32 = vmul.f32 %v2618_v0, %v2613_v42  ;;  %v2610_v50 = vmul.f32 %v2602_v26, %v4652_v59  ;;  %v2604_v38 = vpop.f32.mrb[49].mxu1 }
 0xc8b   :  { %v2636_v18 = vmax.f32 %v2632_v16, 0.0  ;;  %v2625_v33 = vadd.f32 %v2621_v32, %v2347_v62  ;;  %v2614_v60 = vadd.f32 %v2610_v50, %v2604_v38 }
 0xc8d   :  { %2640 = vst [vmem:[%s4980_s13 + $0x8] sm:$0xff] %v2636_v18  ;;  %v2633_v9 = vadd.f32 %v2630_v40, %v2625_v33  ;;  %v2622_v45 = vmul.f32 %v2618_v0, %v2614_v60 }
 0xc8f   :  { %v2637_v47 = vmax.f32 %v2633_v9, 0.0  ;;  %v2626_v17 = vadd.f32 %v2622_v45, %v2348_v22 }
 0xc91   :  { %2641 = vst [vmem:[%s4980_s13 + $0x10] sm:$0xff] %v2637_v47  ;;  %v2634_v20 = vadd.f32 %v2630_v40, %v2626_v17 }
 0xc93   :  { %v2638_v55 = vmax.f32 %v2634_v20, 0.0 }
 0xc95   :  { %2642 = vst [vmem:[%s4980_s13 + $0x18] sm:$0xff] %v2638_v55 }
 0xc96   :  { %2647 = vsyncpa [#allocation4], 1 }

</bundles_post_ra>
